<compile_context>
chip_gen: v7x
topology: tpu7x:2x2x1
jax: 0.10.0
libtpu: 0.0.40
codegen_flags: <defaults>
</compile_context>

<pallas_src>
import functools
import math

import jax
import jax.numpy as jnp
from jax.experimental import pallas as pl
from jax.experimental.pallas import tpu as pltpu

N_RELATIONS = 2  # metadata: [('user','follower','user'), ('user','following','user')]


# ----------------------------------------------------------------------------
# In-kernel elementwise helpers (traced into the Mosaic kernel)
# ----------------------------------------------------------------------------
def _erf(z):
    """erf via Abramowitz–Stegun 7.1.26 (|err| < 1.5e-7 ≈ f32 eps); exp/where/mul only."""
    a1, a2, a3, a4, a5 = 0.254829592, -0.284496736, 1.421413741, -1.453152027, 1.061405429
    p = 0.3275911
    x = jnp.where(z >= 0.0, z, -z)
    t = 1.0 / (1.0 + p * x)
    poly = ((((a5 * t + a4) * t + a3) * t + a2) * t + a1) * t
    y = 1.0 - poly * jnp.exp(-x * x)
    return jnp.where(z >= 0.0, y, -y)


def _gelu_exact(x):
    # Matches torch.nn.functional.gelu (erf form) to f32 accuracy.
    return 0.5 * x * (1.0 + _erf(x * (1.0 / math.sqrt(2.0))))


def _activation(y, name):
    if name == "relu":
        return jnp.maximum(y, 0.0)
    if name == "leakyrelu":
        return jnp.where(y > 0.0, y, 0.01 * y)
    if name == "elu":
        return jnp.where(y > 0.0, y, jnp.exp(jnp.minimum(y, 0.0)) - 1.0)
    raise ValueError(name)


# ----------------------------------------------------------------------------
# Single fused Pallas kernel: MLP -> HGTConv -> act -> pool -> out
# ----------------------------------------------------------------------------
def _hgt_fused_kernel(x_ref, adj_ref, blob_ref, o_ref, *, layout, heads, n_rel, act):
    """x_ref: (N, d1+d2+d3); adj_ref: (R, N, N) edge counts; blob_ref: packed params."""
    f32 = jnp.float32
    N = x_ref.shape[0]

    def P(name):  # static, 8-row-aligned slice of the parameter blob (VMEM, no DMA)
        r, h, w = layout[name]
        return blob_ref[r:r + h, :w]

    hidden = layout["a_w"][2]
    D = hidden // heads

    # ---- MLP: per-input linears as one block-diagonal matmul, then fusion linear ----
    h1 = jnp.dot(x_ref[...], P("w123"), preferred_element_type=f32) + P("b123")
    h1 = _activation(h1, act)
    x = jnp.dot(h1, P("wf"), preferred_element_type=f32) + P("bf")
    x = _activation(x, act)
    # dropout: eval mode -> identity

    # ---- HGTConv (last layer only; earlier layers are dead, see prepare_fused_params) ----
    # ONE fused projection: [ q | kt_rel0 | kt_rel1 | msg_rel0 | msg_rel1 | 0-pad ] (N, 256).
    # Relation transforms a_rel (with p_rel/sqrt(D)) and m_rel are pre-folded into the weight.
    proj = jnp.dot(x, P("proj_w"), preferred_element_type=f32) + P("proj_b")
    q = proj[:, :hidden]

    agg = None
    for e in range(n_rel):                          # static 2-way unroll over relations
        kt = proj[:, (1 + e) * hidden:(2 + e) * hidden]                  # keys (scaled)
        msg = proj[:, (1 + n_rel + e) * hidden:(2 + n_rel + e) * hidden]  # messages
        adj = adj_ref[e]                                                  # (N, N) counts

        # Per-head scores packed lane-dense: (N, heads*N) = (16, 64).
        scores_p = jnp.concatenate(
            [jax.lax.dot_general(q[:, hd * D:(hd + 1) * D], kt[:, hd * D:(hd + 1) * D],
                                 (((1,), (1,)), ((), ())), preferred_element_type=f32)
             for hd in range(heads)], axis=1)
        adj_p = jnp.concatenate([adj] * heads, axis=1)                    # (N, heads*N)

        # Single per-destination-row shift (shared across heads/sources): softmax is
        # invariant to any per-row constant; non-edges contribute 0 via adj_p == 0.
        rmax = jnp.max(scores_p, axis=1, keepdims=True)
        w_p = adj_p * jnp.exp(scores_p - rmax)       # one packed EUP exp chain per relation

        head_outs = []
        for hd in range(heads):                      # per-head reductions + weighted sum
            w_h = w_p[:, hd * N:(hd + 1) * N]
            denom = jnp.sum(w_h, axis=1, keepdims=True)
            o_h = jnp.dot(w_h, msg[:, hd * D:(hd + 1) * D], preferred_element_type=f32)
            d = jnp.maximum(denom, f32(1e-30))       # no inf path for empty rows
            inv = pl.reciprocal(d, approx=True)      # EUP slot
            inv = inv * (2.0 - d * inv)              # one Newton step -> ~f32-exact
            head_outs.append(o_h * inv)              # o_h == 0 exactly when denom == 0
        rel_out = jnp.concatenate(head_outs, axis=1)                      # (N, hidden)
        agg = rel_out if agg is None else agg + rel_out                   # group='sum'

    conv = _gelu_exact(agg)                                               # F.gelu (erf)
    conv = jnp.dot(conv, P("a_w"), preferred_element_type=f32) + P("a_b")
    gate = P("gate")                                                      # sigmoid(skip)
    xl = gate * conv + (1.0 - gate) * x                                   # skip gate
    xl = _activation(xl, act)                                             # per-layer epilogue

    # ---- pool + out head (out head padded to 128 lanes -> unmasked final store) ----
    y = jnp.dot(xl, P("pool_w"), preferred_element_type=f32) + P("pool_b")
    y = _activation(y, act)                                               # dropout=id, act
    o_ref[...] = jnp.dot(y, P("out_w"), preferred_element_type=f32) + P("out_b")


def hgt_fused_call(x_cat, adj, blob, *, layout, heads, n_rel, act):
    """One pallas_call for the whole forward: 3 input DMAs, everything VMEM-resident."""
    N = x_cat.shape[0]
    out_pad = layout["out_w"][2]
    vmem = lambda: pl.BlockSpec(memory_space=pltpu.MemorySpace.VMEM)
    return pl.pallas_call(
        functools.partial(_hgt_fused_kernel, layout=layout, heads=heads,
                          n_rel=n_rel, act=act),
        out_shape=jax.ShapeDtypeStruct((N, out_pad), jnp.float32),
        in_specs=[vmem(), vmem(), vmem()],
        out_specs=vmem(),
    )(x_cat, adj, blob)


# ----------------------------------------------------------------------------
# Parameter preparation (one-time re-layout; no per-forward XLA work on params)
# ----------------------------------------------------------------------------
def _block_diag(*mats):
    rows = sum(m.shape[0] for m in mats)
    cols = sum(m.shape[1] for m in mats)
    out = jnp.zeros((rows, cols), mats[0].dtype)
    r = c = 0
    for m in mats:
        out = out.at[r:r + m.shape[0], c:c + m.shape[1]].set(m)
        r += m.shape[0]
        c += m.shape[1]
    return out


def _pack_blob(entries, width):
    """Pack (name, 1D/2D array) entries into one (rows, width) f32 blob.

    Each entry starts at an 8-row-aligned offset so in-kernel slices never cross a
    sublane tile boundary.  Returns (blob, {name: (row_off, nrows, ncols)}).
    """
    layout, parts, r = {}, [], 0
    for name, arr in entries:
        arr = jnp.asarray(arr, jnp.float32)
        if arr.ndim == 1:
            arr = arr[None, :]
        h, w = arr.shape
        assert w <= width, (name, w, width)
        h_pad = -(-h // 8) * 8
        parts.append(jnp.zeros((h_pad, width), jnp.float32).at[:h, :w].set(arr))
        layout[name] = (r, h, w)
        r += h_pad
    return jnp.concatenate(parts, axis=0), layout


def prepare_fused_params(params, cfg):
    """Re-layout PyTorch-style parameters into the fused-kernel blob (done once).

    NOTE: the PyTorch forward never writes conv outputs back into x_dict, so every conv
    layer reads the original MLP features and only the LAST layer's output reaches the
    pooling head.  Dead layers are skipped (output-identical).
    """
    assert cfg["gnn_n_layers"] >= 1
    hidden = cfg["gnn_hidden_dim"]
    heads = cfg["att_heads"]
    D = hidden // heads
    mlp = params["mlp"]
    conv = params["convs"][-1]
    n_rel = conv["a_rel"].shape[0]

    def blk(mats):  # (H, D, D) -> (hidden, hidden) block diagonal
        return _block_diag(*[mats[h] for h in range(mats.shape[0])])

    # fold p_rel / sqrt(D) into the block-diagonal a_rel (exact: scalar per head)
    a_scaled = conv["a_rel"] * (conv["p_rel"] / math.sqrt(D))[:, :, None, None]
    a_blk = [blk(a_scaled[e]) for e in range(n_rel)]
    m_blk = [blk(conv["m_rel"][e]) for e in range(n_rel)]

    # Fused projection weight/bias: [ q | k@a_blk[e]... | v@m_blk[e]... ], zero-padded
    # to 256 columns (one aligned MXU tile on v6e/v7x; two aligned passes on v5e).
    proj_w = jnp.concatenate(
        [conv["q_w"]] + [conv["k_w"] @ a_blk[e] for e in range(n_rel)]
                      + [conv["v_w"] @ m_blk[e] for e in range(n_rel)], axis=1)
    proj_b = jnp.concatenate(
        [conv["q_b"]] + [conv["k_b"] @ a_blk[e] for e in range(n_rel)]
                      + [conv["v_b"] @ m_blk[e] for e in range(n_rel)])
    proj_pad = 256
    proj_w = jnp.zeros((hidden, proj_pad), jnp.float32).at[:, :proj_w.shape[1]].set(proj_w)
    proj_b = jnp.zeros((proj_pad,), jnp.float32).at[:proj_b.shape[0]].set(proj_b)

    # Out head padded to 128 lanes so the kernel's final store is unmasked.
    out_pad = 128
    out_w = jnp.zeros((hidden, out_pad), jnp.float32).at[:, :params["out_w"].shape[1]].set(params["out_w"])
    out_b = jnp.zeros((out_pad,), jnp.float32).at[:params["out_b"].shape[0]].set(params["out_b"])

    alpha = jax.nn.sigmoid(conv["skip"]).astype(jnp.float32)

    entries = [
        ("w123", _block_diag(mlp["w1"], mlp["w2"], mlp["w3"])),
        ("b123", jnp.concatenate([mlp["b1"], mlp["b2"], mlp["b3"]])),
        ("wf", mlp["wf"]), ("bf", mlp["bf"]),
        ("proj_w", proj_w), ("proj_b", proj_b),
        ("a_w", conv["a_w"]), ("a_b", conv["a_b"]),
        ("gate", jnp.full((1, hidden), alpha, jnp.float32)),
        ("pool_w", params["pool_w"]), ("pool_b", params["pool_b"]),
        ("out_w", out_w), ("out_b", out_b),
    ]
    blob, layout = _pack_blob(entries, width=proj_pad)
    return blob, layout


# ----------------------------------------------------------------------------
# Forward wrapper (adjacency construction stays in XLA; rest is one kernel)
# ----------------------------------------------------------------------------
def hgt_forward(blob, x1, x2, x3, edge_index, edge_type, *, layout, cfg):
    act = cfg["activation"].lower()
    heads = cfg["att_heads"]
    N = x1.shape[0]

    x_cat = jnp.concatenate([x1, x2, x3], axis=1).astype(jnp.float32)

    # Dense per-relation edge-COUNT adjacency (duplicate edges accumulate); the scatter
    # has no clean tiny-Pallas equivalent and is O(E) — kept in XLA.
    src, dst = edge_index[0], edge_index[1]
    adjs = []
    for e in range(N_RELATIONS):
        m = (edge_type == e).astype(jnp.float32)
        adjs.append(jnp.zeros((N, N), jnp.float32).at[dst, src].add(m))
    adj = jnp.stack(adjs, axis=0)

    out_padded = hgt_fused_call(x_cat, adj, blob, layout=layout, heads=heads,
                                n_rel=N_RELATIONS, act=act)
    return out_padded[:, :2]          # strip the lane padding of the out head


# ----------------------------------------------------------------------------
# Deterministic parameter init (same parameterization as the reference version)
# ----------------------------------------------------------------------------
def init_params(key, cfg, in_dims):
    hidden = cfg["gnn_hidden_dim"]
    heads = cfg["att_heads"]
    D = hidden // heads
    d1, d2, d3 = in_dims

    def nrm(k, shape, scale=0.1):
        return (scale * jax.random.normal(k, shape)).astype(jnp.float32)

    keys = iter(jax.random.split(key, 64))
    params = {
        "mlp": {
            "w1": nrm(next(keys), (d1, hidden)), "b1": jnp.zeros((hidden,), jnp.float32),
            "w2": nrm(next(keys), (d2, hidden)), "b2": jnp.zeros((hidden,), jnp.float32),
            "w3": nrm(next(keys), (d3, hidden)), "b3": jnp.zeros((hidden,), jnp.float32),
            "wf": nrm(next(keys), (3 * hidden, hidden)), "bf": jnp.zeros((hidden,), jnp.float32),
        },
        "convs": [],
        "pool_w": nrm(next(keys), (hidden, hidden)), "pool_b": jnp.zeros((hidden,), jnp.float32),
        "out_w": nrm(next(keys), (hidden, 2)), "out_b": jnp.zeros((2,), jnp.float32),
    }
    for _ in range(cfg["gnn_n_layers"]):
        params["convs"].append({
            "k_w": nrm(next(keys), (hidden, hidden)), "k_b": jnp.zeros((hidden,), jnp.float32),
            "q_w": nrm(next(keys), (hidden, hidden)), "q_b": jnp.zeros((hidden,), jnp.float32),
            "v_w": nrm(next(keys), (hidden, hidden)), "v_b": jnp.zeros((hidden,), jnp.float32),
            "a_w": nrm(next(keys), (hidden, hidden)), "a_b": jnp.zeros((hidden,), jnp.float32),
            "a_rel": nrm(next(keys), (N_RELATIONS, heads, D, D)),
            "m_rel": nrm(next(keys), (N_RELATIONS, heads, D, D)),
            "p_rel": jnp.ones((N_RELATIONS, heads), jnp.float32),  # PyG inits p_rel to ones
            "skip": jnp.float32(1.0),                               # PyG inits skip to ones
        })
    return params


# ----------------------------------------------------------------------------
if __name__ == "__main__":
    model_config = {
        "gnn_hidden_dim": 32,
        "gnn_n_layers": 2,
        "att_heads": 4,
        "dropout": 0.3,        # eval mode -> identity
        "activation": "relu",
    }
    N_NODES, N_EDGES = 16, 40
    D1, D2, D3 = 8, 12, 6

    key = jax.random.PRNGKey(0)
    k0, k1, k2, k3, k4, k5 = jax.random.split(key, 6)
    x1 = jax.random.normal(k0, (N_NODES, D1), jnp.float32)
    x2 = jax.random.normal(k1, (N_NODES, D2), jnp.float32)
    x3 = jax.random.normal(k2, (N_NODES, D3), jnp.float32)
    edge_index = jax.random.randint(k3, (2, N_EDGES), 0, N_NODES, dtype=jnp.int32)
    edge_type = jax.random.randint(k4, (N_EDGES,), 0, N_RELATIONS, dtype=jnp.int32)

    params = init_params(k5, model_config, (D1, D2, D3))
    blob, layout = prepare_fused_params(params, model_config)   # one-time re-layout

    fwd = jax.jit(functools.partial(hgt_forward, layout=layout, cfg=model_config))
    out = fwd(blob, x1, x2, x3, edge_index, edge_type)
    out = jax.block_until_ready(out)
    assert out.shape == (N_NODES, 2) and out.dtype == jnp.float32
    assert bool(jnp.all(jnp.isfinite(out)))
    print("KERNEL_OK")
</pallas_src>

<mosaic_0001>
module attributes {stable_mosaic.version = 11 : i64} {
  func.func @_hgt_fused_kernel(%arg0: memref<16x26xf32, #tpu.memory_space<vmem>>, %arg1: memref<2x16x16xf32, #tpu.memory_space<vmem>>, %arg2: memref<312x256xf32, #tpu.memory_space<vmem>>, %arg3: memref<16x128xf32, #tpu.memory_space<vmem>>) attributes {dimension_semantics = [], scalar_prefetch = 0 : i64, scratch_operands = 0 : i64, tpu.core_type = #tpu.core_type<tc>} {
    %c0 = arith.constant 0 : index
    %c0_0 = arith.constant 0 : index
    %0 = vector.load %arg0[%c0, %c0_0] : memref<16x26xf32, #tpu.memory_space<vmem>>, vector<16x26xf32>
    %c0_1 = arith.constant 0 : index
    %c0_2 = arith.constant 0 : index
    %1 = vector.load %arg2[%c0_1, %c0_2] : memref<312x256xf32, #tpu.memory_space<vmem>>, vector<26x96xf32>
    %cst = arith.constant dense<0.000000e+00> : vector<16x96xf32>
    %2 = tpu.matmul %0, %1, %cst {dimension_numbers = #tpu.dot_dimension_numbers<[1], [0], [0], [1], [0, 0, 1, 1], [], []>} : vector<16x26xf32>, vector<26x96xf32>, vector<16x96xf32> -> vector<16x96xf32>
    %c32 = arith.constant 32 : index
    %c0_3 = arith.constant 0 : index
    %3 = vector.load %arg2[%c32, %c0_3] : memref<312x256xf32, #tpu.memory_space<vmem>>, vector<1x96xf32>
    %4 = vector.broadcast %3 : vector<1x96xf32> to vector<16x96xf32>
    %5 = arith.addf %2, %4 : vector<16x96xf32>
    %cst_4 = arith.constant 0.000000e+00 : f32
    %6 = vector.broadcast %cst_4 : f32 to vector<16x96xf32>
    %7 = arith.maximumf %5, %6 : vector<16x96xf32>
    %c40 = arith.constant 40 : index
    %c0_5 = arith.constant 0 : index
    %8 = vector.load %arg2[%c40, %c0_5] : memref<312x256xf32, #tpu.memory_space<vmem>>, vector<96x32xf32>
    %cst_6 = arith.constant dense<0.000000e+00> : vector<16x32xf32>
    %9 = tpu.matmul %7, %8, %cst_6 {dimension_numbers = #tpu.dot_dimension_numbers<[1], [0], [0], [1], [0, 0, 1, 1], [], []>} : vector<16x96xf32>, vector<96x32xf32>, vector<16x32xf32> -> vector<16x32xf32>
    %c136 = arith.constant 136 : index
    %c0_7 = arith.constant 0 : index
    %10 = vector.load %arg2[%c136, %c0_7] : memref<312x256xf32, #tpu.memory_space<vmem>>, vector<1x32xf32>
    %11 = vector.broadcast %10 : vector<1x32xf32> to vector<16x32xf32>
    %12 = arith.addf %9, %11 : vector<16x32xf32>
    %cst_8 = arith.constant 0.000000e+00 : f32
    %13 = vector.broadcast %cst_8 : f32 to vector<16x32xf32>
    %14 = arith.maximumf %12, %13 : vector<16x32xf32>
    %c144 = arith.constant 144 : index
    %c0_9 = arith.constant 0 : index
    %15 = vector.load %arg2[%c144, %c0_9] : memref<312x256xf32, #tpu.memory_space<vmem>>, vector<32x256xf32>
    %cst_10 = arith.constant dense<0.000000e+00> : vector<16x256xf32>
    %16 = tpu.matmul %14, %15, %cst_10 {dimension_numbers = #tpu.dot_dimension_numbers<[1], [0], [0], [1], [0, 0, 1, 1], [], []>} : vector<16x32xf32>, vector<32x256xf32>, vector<16x256xf32> -> vector<16x256xf32>
    %c176 = arith.constant 176 : index
    %c0_11 = arith.constant 0 : index
    %17 = vector.load %arg2[%c176, %c0_11] : memref<312x256xf32, #tpu.memory_space<vmem>>, vector<1x256xf32>
    %18 = vector.broadcast %17 : vector<1x256xf32> to vector<16x256xf32>
    %19 = arith.addf %16, %18 : vector<16x256xf32>
    %20 = vector.extract_strided_slice %19 {offsets = [0, 0], sizes = [16, 32], strides = [1, 1]} : vector<16x256xf32> to vector<16x32xf32>
    %21 = vector.extract_strided_slice %19 {offsets = [0, 32], sizes = [16, 32], strides = [1, 1]} : vector<16x256xf32> to vector<16x32xf32>
    %22 = vector.extract_strided_slice %19 {offsets = [0, 96], sizes = [16, 32], strides = [1, 1]} : vector<16x256xf32> to vector<16x32xf32>
    %c0_12 = arith.constant 0 : index
    %c0_13 = arith.constant 0 : index
    %c0_14 = arith.constant 0 : index
    %23 = vector.load %arg1[%c0_12, %c0_13, %c0_14] : memref<2x16x16xf32, #tpu.memory_space<vmem>>, vector<1x16x16xf32>
    %24 = vector.shape_cast %23 : vector<1x16x16xf32> to vector<16x16xf32>
    %25 = vector.extract_strided_slice %20 {offsets = [0, 0], sizes = [16, 8], strides = [1, 1]} : vector<16x32xf32> to vector<16x8xf32>
    %26 = vector.extract_strided_slice %21 {offsets = [0, 0], sizes = [16, 8], strides = [1, 1]} : vector<16x32xf32> to vector<16x8xf32>
    %cst_15 = arith.constant dense<0.000000e+00> : vector<16x16xf32>
    %27 = tpu.matmul %25, %26, %cst_15 {dimension_numbers = #tpu.dot_dimension_numbers<[1], [1], [0], [0], [0, 0, 1, 0], [], []>} : vector<16x8xf32>, vector<16x8xf32>, vector<16x16xf32> -> vector<16x16xf32>
    %28 = vector.extract_strided_slice %20 {offsets = [0, 8], sizes = [16, 8], strides = [1, 1]} : vector<16x32xf32> to vector<16x8xf32>
    %29 = vector.extract_strided_slice %21 {offsets = [0, 8], sizes = [16, 8], strides = [1, 1]} : vector<16x32xf32> to vector<16x8xf32>
    %cst_16 = arith.constant dense<0.000000e+00> : vector<16x16xf32>
    %30 = tpu.matmul %28, %29, %cst_16 {dimension_numbers = #tpu.dot_dimension_numbers<[1], [1], [0], [0], [0, 0, 1, 0], [], []>} : vector<16x8xf32>, vector<16x8xf32>, vector<16x16xf32> -> vector<16x16xf32>
    %31 = vector.extract_strided_slice %20 {offsets = [0, 16], sizes = [16, 8], strides = [1, 1]} : vector<16x32xf32> to vector<16x8xf32>
    %32 = vector.extract_strided_slice %21 {offsets = [0, 16], sizes = [16, 8], strides = [1, 1]} : vector<16x32xf32> to vector<16x8xf32>
    %cst_17 = arith.constant dense<0.000000e+00> : vector<16x16xf32>
    %33 = tpu.matmul %31, %32, %cst_17 {dimension_numbers = #tpu.dot_dimension_numbers<[1], [1], [0], [0], [0, 0, 1, 0], [], []>} : vector<16x8xf32>, vector<16x8xf32>, vector<16x16xf32> -> vector<16x16xf32>
    %34 = vector.extract_strided_slice %20 {offsets = [0, 24], sizes = [16, 8], strides = [1, 1]} : vector<16x32xf32> to vector<16x8xf32>
    %35 = vector.extract_strided_slice %21 {offsets = [0, 24], sizes = [16, 8], strides = [1, 1]} : vector<16x32xf32> to vector<16x8xf32>
    %cst_18 = arith.constant dense<0.000000e+00> : vector<16x16xf32>
    %36 = tpu.matmul %34, %35, %cst_18 {dimension_numbers = #tpu.dot_dimension_numbers<[1], [1], [0], [0], [0, 0, 1, 0], [], []>} : vector<16x8xf32>, vector<16x8xf32>, vector<16x16xf32> -> vector<16x16xf32>
    %37 = tpu.concatenate %27, %30, %33, %36 in 1 : vector<16x16xf32>, vector<16x16xf32>, vector<16x16xf32>, vector<16x16xf32> -> vector<16x64xf32>
    %38 = tpu.concatenate %24, %24, %24, %24 in 1 : vector<16x16xf32>, vector<16x16xf32>, vector<16x16xf32>, vector<16x16xf32> -> vector<16x64xf32>
    %cst_19 = arith.constant dense<0xFF800000> : vector<16xf32>
    %39 = vector.multi_reduction <maximumf>, %37, %cst_19 [1] : vector<16x64xf32> to vector<16xf32>
    %40 = vector.shape_cast %39 : vector<16xf32> to vector<16x1xf32>
    %41 = vector.broadcast %40 : vector<16x1xf32> to vector<16x64xf32>
    %42 = arith.subf %37, %41 : vector<16x64xf32>
    %43 = math.exp %42 : vector<16x64xf32>
    %44 = arith.mulf %38, %43 : vector<16x64xf32>
    %45 = vector.extract_strided_slice %44 {offsets = [0, 0], sizes = [16, 16], strides = [1, 1]} : vector<16x64xf32> to vector<16x16xf32>
    %cst_20 = arith.constant dense<0.000000e+00> : vector<16xf32>
    %46 = vector.multi_reduction <add>, %45, %cst_20 [1] : vector<16x16xf32> to vector<16xf32>
    %47 = vector.shape_cast %46 : vector<16xf32> to vector<16x1xf32>
    %48 = vector.extract_strided_slice %22 {offsets = [0, 0], sizes = [16, 8], strides = [1, 1]} : vector<16x32xf32> to vector<16x8xf32>
    %cst_21 = arith.constant dense<0.000000e+00> : vector<16x8xf32>
    %49 = tpu.matmul %45, %48, %cst_21 {dimension_numbers = #tpu.dot_dimension_numbers<[1], [0], [0], [1], [0, 0, 1, 1], [], []>} : vector<16x16xf32>, vector<16x8xf32>, vector<16x8xf32> -> vector<16x8xf32>
    %cst_22 = arith.constant 1.000000e-30 : f32
    %50 = vector.broadcast %cst_22 : f32 to vector<16x1xf32>
    %51 = arith.maximumf %47, %50 : vector<16x1xf32>
    %52 = tpu.reciprocal %51 {approx = true} : vector<16x1xf32> -> vector<16x1xf32>
    %53 = arith.mulf %51, %52 : vector<16x1xf32>
    %cst_23 = arith.constant 2.000000e+00 : f32
    %54 = vector.broadcast %cst_23 : f32 to vector<16x1xf32>
    %55 = arith.subf %54, %53 : vector<16x1xf32>
    %56 = arith.mulf %52, %55 : vector<16x1xf32>
    %57 = vector.broadcast %56 : vector<16x1xf32> to vector<16x8xf32>
    %58 = arith.mulf %49, %57 : vector<16x8xf32>
    %59 = vector.extract_strided_slice %44 {offsets = [0, 16], sizes = [16, 16], strides = [1, 1]} : vector<16x64xf32> to vector<16x16xf32>
    %cst_24 = arith.constant dense<0.000000e+00> : vector<16xf32>
    %60 = vector.multi_reduction <add>, %59, %cst_24 [1] : vector<16x16xf32> to vector<16xf32>
    %61 = vector.shape_cast %60 : vector<16xf32> to vector<16x1xf32>
    %62 = vector.extract_strided_slice %22 {offsets = [0, 8], sizes = [16, 8], strides = [1, 1]} : vector<16x32xf32> to vector<16x8xf32>
    %cst_25 = arith.constant dense<0.000000e+00> : vector<16x8xf32>
    %63 = tpu.matmul %59, %62, %cst_25 {dimension_numbers = #tpu.dot_dimension_numbers<[1], [0], [0], [1], [0, 0, 1, 1], [], []>} : vector<16x16xf32>, vector<16x8xf32>, vector<16x8xf32> -> vector<16x8xf32>
    %cst_26 = arith.constant 1.000000e-30 : f32
    %64 = vector.broadcast %cst_26 : f32 to vector<16x1xf32>
    %65 = arith.maximumf %61, %64 : vector<16x1xf32>
    %66 = tpu.reciprocal %65 {approx = true} : vector<16x1xf32> -> vector<16x1xf32>
    %67 = arith.mulf %65, %66 : vector<16x1xf32>
    %cst_27 = arith.constant 2.000000e+00 : f32
    %68 = vector.broadcast %cst_27 : f32 to vector<16x1xf32>
    %69 = arith.subf %68, %67 : vector<16x1xf32>
    %70 = arith.mulf %66, %69 : vector<16x1xf32>
    %71 = vector.broadcast %70 : vector<16x1xf32> to vector<16x8xf32>
    %72 = arith.mulf %63, %71 : vector<16x8xf32>
    %73 = vector.extract_strided_slice %44 {offsets = [0, 32], sizes = [16, 16], strides = [1, 1]} : vector<16x64xf32> to vector<16x16xf32>
    %cst_28 = arith.constant dense<0.000000e+00> : vector<16xf32>
    %74 = vector.multi_reduction <add>, %73, %cst_28 [1] : vector<16x16xf32> to vector<16xf32>
    %75 = vector.shape_cast %74 : vector<16xf32> to vector<16x1xf32>
    %76 = vector.extract_strided_slice %22 {offsets = [0, 16], sizes = [16, 8], strides = [1, 1]} : vector<16x32xf32> to vector<16x8xf32>
    %cst_29 = arith.constant dense<0.000000e+00> : vector<16x8xf32>
    %77 = tpu.matmul %73, %76, %cst_29 {dimension_numbers = #tpu.dot_dimension_numbers<[1], [0], [0], [1], [0, 0, 1, 1], [], []>} : vector<16x16xf32>, vector<16x8xf32>, vector<16x8xf32> -> vector<16x8xf32>
    %cst_30 = arith.constant 1.000000e-30 : f32
    %78 = vector.broadcast %cst_30 : f32 to vector<16x1xf32>
    %79 = arith.maximumf %75, %78 : vector<16x1xf32>
    %80 = tpu.reciprocal %79 {approx = true} : vector<16x1xf32> -> vector<16x1xf32>
    %81 = arith.mulf %79, %80 : vector<16x1xf32>
    %cst_31 = arith.constant 2.000000e+00 : f32
    %82 = vector.broadcast %cst_31 : f32 to vector<16x1xf32>
    %83 = arith.subf %82, %81 : vector<16x1xf32>
    %84 = arith.mulf %80, %83 : vector<16x1xf32>
    %85 = vector.broadcast %84 : vector<16x1xf32> to vector<16x8xf32>
    %86 = arith.mulf %77, %85 : vector<16x8xf32>
    %87 = vector.extract_strided_slice %44 {offsets = [0, 48], sizes = [16, 16], strides = [1, 1]} : vector<16x64xf32> to vector<16x16xf32>
    %cst_32 = arith.constant dense<0.000000e+00> : vector<16xf32>
    %88 = vector.multi_reduction <add>, %87, %cst_32 [1] : vector<16x16xf32> to vector<16xf32>
    %89 = vector.shape_cast %88 : vector<16xf32> to vector<16x1xf32>
    %90 = vector.extract_strided_slice %22 {offsets = [0, 24], sizes = [16, 8], strides = [1, 1]} : vector<16x32xf32> to vector<16x8xf32>
    %cst_33 = arith.constant dense<0.000000e+00> : vector<16x8xf32>
    %91 = tpu.matmul %87, %90, %cst_33 {dimension_numbers = #tpu.dot_dimension_numbers<[1], [0], [0], [1], [0, 0, 1, 1], [], []>} : vector<16x16xf32>, vector<16x8xf32>, vector<16x8xf32> -> vector<16x8xf32>
    %cst_34 = arith.constant 1.000000e-30 : f32
    %92 = vector.broadcast %cst_34 : f32 to vector<16x1xf32>
    %93 = arith.maximumf %89, %92 : vector<16x1xf32>
    %94 = tpu.reciprocal %93 {approx = true} : vector<16x1xf32> -> vector<16x1xf32>
    %95 = arith.mulf %93, %94 : vector<16x1xf32>
    %cst_35 = arith.constant 2.000000e+00 : f32
    %96 = vector.broadcast %cst_35 : f32 to vector<16x1xf32>
    %97 = arith.subf %96, %95 : vector<16x1xf32>
    %98 = arith.mulf %94, %97 : vector<16x1xf32>
    %99 = vector.broadcast %98 : vector<16x1xf32> to vector<16x8xf32>
    %100 = arith.mulf %91, %99 : vector<16x8xf32>
    %101 = tpu.concatenate %58, %72, %86, %100 in 1 : vector<16x8xf32>, vector<16x8xf32>, vector<16x8xf32>, vector<16x8xf32> -> vector<16x32xf32>
    %102 = vector.extract_strided_slice %19 {offsets = [0, 64], sizes = [16, 32], strides = [1, 1]} : vector<16x256xf32> to vector<16x32xf32>
    %103 = vector.extract_strided_slice %19 {offsets = [0, 128], sizes = [16, 32], strides = [1, 1]} : vector<16x256xf32> to vector<16x32xf32>
    %c1 = arith.constant 1 : index
    %c0_36 = arith.constant 0 : index
    %c0_37 = arith.constant 0 : index
    %104 = vector.load %arg1[%c1, %c0_36, %c0_37] : memref<2x16x16xf32, #tpu.memory_space<vmem>>, vector<1x16x16xf32>
    %105 = vector.shape_cast %104 : vector<1x16x16xf32> to vector<16x16xf32>
    %106 = vector.extract_strided_slice %20 {offsets = [0, 0], sizes = [16, 8], strides = [1, 1]} : vector<16x32xf32> to vector<16x8xf32>
    %107 = vector.extract_strided_slice %102 {offsets = [0, 0], sizes = [16, 8], strides = [1, 1]} : vector<16x32xf32> to vector<16x8xf32>
    %cst_38 = arith.constant dense<0.000000e+00> : vector<16x16xf32>
    %108 = tpu.matmul %106, %107, %cst_38 {dimension_numbers = #tpu.dot_dimension_numbers<[1], [1], [0], [0], [0, 0, 1, 0], [], []>} : vector<16x8xf32>, vector<16x8xf32>, vector<16x16xf32> -> vector<16x16xf32>
    %109 = vector.extract_strided_slice %20 {offsets = [0, 8], sizes = [16, 8], strides = [1, 1]} : vector<16x32xf32> to vector<16x8xf32>
    %110 = vector.extract_strided_slice %102 {offsets = [0, 8], sizes = [16, 8], strides = [1, 1]} : vector<16x32xf32> to vector<16x8xf32>
    %cst_39 = arith.constant dense<0.000000e+00> : vector<16x16xf32>
    %111 = tpu.matmul %109, %110, %cst_39 {dimension_numbers = #tpu.dot_dimension_numbers<[1], [1], [0], [0], [0, 0, 1, 0], [], []>} : vector<16x8xf32>, vector<16x8xf32>, vector<16x16xf32> -> vector<16x16xf32>
    %112 = vector.extract_strided_slice %20 {offsets = [0, 16], sizes = [16, 8], strides = [1, 1]} : vector<16x32xf32> to vector<16x8xf32>
    %113 = vector.extract_strided_slice %102 {offsets = [0, 16], sizes = [16, 8], strides = [1, 1]} : vector<16x32xf32> to vector<16x8xf32>
    %cst_40 = arith.constant dense<0.000000e+00> : vector<16x16xf32>
    %114 = tpu.matmul %112, %113, %cst_40 {dimension_numbers = #tpu.dot_dimension_numbers<[1], [1], [0], [0], [0, 0, 1, 0], [], []>} : vector<16x8xf32>, vector<16x8xf32>, vector<16x16xf32> -> vector<16x16xf32>
    %115 = vector.extract_strided_slice %20 {offsets = [0, 24], sizes = [16, 8], strides = [1, 1]} : vector<16x32xf32> to vector<16x8xf32>
    %116 = vector.extract_strided_slice %102 {offsets = [0, 24], sizes = [16, 8], strides = [1, 1]} : vector<16x32xf32> to vector<16x8xf32>
    %cst_41 = arith.constant dense<0.000000e+00> : vector<16x16xf32>
    %117 = tpu.matmul %115, %116, %cst_41 {dimension_numbers = #tpu.dot_dimension_numbers<[1], [1], [0], [0], [0, 0, 1, 0], [], []>} : vector<16x8xf32>, vector<16x8xf32>, vector<16x16xf32> -> vector<16x16xf32>
    %118 = tpu.concatenate %108, %111, %114, %117 in 1 : vector<16x16xf32>, vector<16x16xf32>, vector<16x16xf32>, vector<16x16xf32> -> vector<16x64xf32>
    %119 = tpu.concatenate %105, %105, %105, %105 in 1 : vector<16x16xf32>, vector<16x16xf32>, vector<16x16xf32>, vector<16x16xf32> -> vector<16x64xf32>
    %cst_42 = arith.constant dense<0xFF800000> : vector<16xf32>
    %120 = vector.multi_reduction <maximumf>, %118, %cst_42 [1] : vector<16x64xf32> to vector<16xf32>
    %121 = vector.shape_cast %120 : vector<16xf32> to vector<16x1xf32>
    %122 = vector.broadcast %121 : vector<16x1xf32> to vector<16x64xf32>
    %123 = arith.subf %118, %122 : vector<16x64xf32>
    %124 = math.exp %123 : vector<16x64xf32>
    %125 = arith.mulf %119, %124 : vector<16x64xf32>
    %126 = vector.extract_strided_slice %125 {offsets = [0, 0], sizes = [16, 16], strides = [1, 1]} : vector<16x64xf32> to vector<16x16xf32>
    %cst_43 = arith.constant dense<0.000000e+00> : vector<16xf32>
    %127 = vector.multi_reduction <add>, %126, %cst_43 [1] : vector<16x16xf32> to vector<16xf32>
    %128 = vector.shape_cast %127 : vector<16xf32> to vector<16x1xf32>
    %129 = vector.extract_strided_slice %103 {offsets = [0, 0], sizes = [16, 8], strides = [1, 1]} : vector<16x32xf32> to vector<16x8xf32>
    %cst_44 = arith.constant dense<0.000000e+00> : vector<16x8xf32>
    %130 = tpu.matmul %126, %129, %cst_44 {dimension_numbers = #tpu.dot_dimension_numbers<[1], [0], [0], [1], [0, 0, 1, 1], [], []>} : vector<16x16xf32>, vector<16x8xf32>, vector<16x8xf32> -> vector<16x8xf32>
    %cst_45 = arith.constant 1.000000e-30 : f32
    %131 = vector.broadcast %cst_45 : f32 to vector<16x1xf32>
    %132 = arith.maximumf %128, %131 : vector<16x1xf32>
    %133 = tpu.reciprocal %132 {approx = true} : vector<16x1xf32> -> vector<16x1xf32>
    %134 = arith.mulf %132, %133 : vector<16x1xf32>
    %cst_46 = arith.constant 2.000000e+00 : f32
    %135 = vector.broadcast %cst_46 : f32 to vector<16x1xf32>
    %136 = arith.subf %135, %134 : vector<16x1xf32>
    %137 = arith.mulf %133, %136 : vector<16x1xf32>
    %138 = vector.broadcast %137 : vector<16x1xf32> to vector<16x8xf32>
    %139 = arith.mulf %130, %138 : vector<16x8xf32>
    %140 = vector.extract_strided_slice %125 {offsets = [0, 16], sizes = [16, 16], strides = [1, 1]} : vector<16x64xf32> to vector<16x16xf32>
    %cst_47 = arith.constant dense<0.000000e+00> : vector<16xf32>
    %141 = vector.multi_reduction <add>, %140, %cst_47 [1] : vector<16x16xf32> to vector<16xf32>
    %142 = vector.shape_cast %141 : vector<16xf32> to vector<16x1xf32>
    %143 = vector.extract_strided_slice %103 {offsets = [0, 8], sizes = [16, 8], strides = [1, 1]} : vector<16x32xf32> to vector<16x8xf32>
    %cst_48 = arith.constant dense<0.000000e+00> : vector<16x8xf32>
    %144 = tpu.matmul %140, %143, %cst_48 {dimension_numbers = #tpu.dot_dimension_numbers<[1], [0], [0], [1], [0, 0, 1, 1], [], []>} : vector<16x16xf32>, vector<16x8xf32>, vector<16x8xf32> -> vector<16x8xf32>
    %cst_49 = arith.constant 1.000000e-30 : f32
    %145 = vector.broadcast %cst_49 : f32 to vector<16x1xf32>
    %146 = arith.maximumf %142, %145 : vector<16x1xf32>
    %147 = tpu.reciprocal %146 {approx = true} : vector<16x1xf32> -> vector<16x1xf32>
    %148 = arith.mulf %146, %147 : vector<16x1xf32>
    %cst_50 = arith.constant 2.000000e+00 : f32
    %149 = vector.broadcast %cst_50 : f32 to vector<16x1xf32>
    %150 = arith.subf %149, %148 : vector<16x1xf32>
    %151 = arith.mulf %147, %150 : vector<16x1xf32>
    %152 = vector.broadcast %151 : vector<16x1xf32> to vector<16x8xf32>
    %153 = arith.mulf %144, %152 : vector<16x8xf32>
    %154 = vector.extract_strided_slice %125 {offsets = [0, 32], sizes = [16, 16], strides = [1, 1]} : vector<16x64xf32> to vector<16x16xf32>
    %cst_51 = arith.constant dense<0.000000e+00> : vector<16xf32>
    %155 = vector.multi_reduction <add>, %154, %cst_51 [1] : vector<16x16xf32> to vector<16xf32>
    %156 = vector.shape_cast %155 : vector<16xf32> to vector<16x1xf32>
    %157 = vector.extract_strided_slice %103 {offsets = [0, 16], sizes = [16, 8], strides = [1, 1]} : vector<16x32xf32> to vector<16x8xf32>
    %cst_52 = arith.constant dense<0.000000e+00> : vector<16x8xf32>
    %158 = tpu.matmul %154, %157, %cst_52 {dimension_numbers = #tpu.dot_dimension_numbers<[1], [0], [0], [1], [0, 0, 1, 1], [], []>} : vector<16x16xf32>, vector<16x8xf32>, vector<16x8xf32> -> vector<16x8xf32>
    %cst_53 = arith.constant 1.000000e-30 : f32
    %159 = vector.broadcast %cst_53 : f32 to vector<16x1xf32>
    %160 = arith.maximumf %156, %159 : vector<16x1xf32>
    %161 = tpu.reciprocal %160 {approx = true} : vector<16x1xf32> -> vector<16x1xf32>
    %162 = arith.mulf %160, %161 : vector<16x1xf32>
    %cst_54 = arith.constant 2.000000e+00 : f32
    %163 = vector.broadcast %cst_54 : f32 to vector<16x1xf32>
    %164 = arith.subf %163, %162 : vector<16x1xf32>
    %165 = arith.mulf %161, %164 : vector<16x1xf32>
    %166 = vector.broadcast %165 : vector<16x1xf32> to vector<16x8xf32>
    %167 = arith.mulf %158, %166 : vector<16x8xf32>
    %168 = vector.extract_strided_slice %125 {offsets = [0, 48], sizes = [16, 16], strides = [1, 1]} : vector<16x64xf32> to vector<16x16xf32>
    %cst_55 = arith.constant dense<0.000000e+00> : vector<16xf32>
    %169 = vector.multi_reduction <add>, %168, %cst_55 [1] : vector<16x16xf32> to vector<16xf32>
    %170 = vector.shape_cast %169 : vector<16xf32> to vector<16x1xf32>
    %171 = vector.extract_strided_slice %103 {offsets = [0, 24], sizes = [16, 8], strides = [1, 1]} : vector<16x32xf32> to vector<16x8xf32>
    %cst_56 = arith.constant dense<0.000000e+00> : vector<16x8xf32>
    %172 = tpu.matmul %168, %171, %cst_56 {dimension_numbers = #tpu.dot_dimension_numbers<[1], [0], [0], [1], [0, 0, 1, 1], [], []>} : vector<16x16xf32>, vector<16x8xf32>, vector<16x8xf32> -> vector<16x8xf32>
    %cst_57 = arith.constant 1.000000e-30 : f32
    %173 = vector.broadcast %cst_57 : f32 to vector<16x1xf32>
    %174 = arith.maximumf %170, %173 : vector<16x1xf32>
    %175 = tpu.reciprocal %174 {approx = true} : vector<16x1xf32> -> vector<16x1xf32>
    %176 = arith.mulf %174, %175 : vector<16x1xf32>
    %cst_58 = arith.constant 2.000000e+00 : f32
    %177 = vector.broadcast %cst_58 : f32 to vector<16x1xf32>
    %178 = arith.subf %177, %176 : vector<16x1xf32>
    %179 = arith.mulf %175, %178 : vector<16x1xf32>
    %180 = vector.broadcast %179 : vector<16x1xf32> to vector<16x8xf32>
    %181 = arith.mulf %172, %180 : vector<16x8xf32>
    %182 = tpu.concatenate %139, %153, %167, %181 in 1 : vector<16x8xf32>, vector<16x8xf32>, vector<16x8xf32>, vector<16x8xf32> -> vector<16x32xf32>
    %183 = arith.addf %101, %182 : vector<16x32xf32>
    %cst_59 = arith.constant 5.000000e-01 : f32
    %184 = vector.broadcast %cst_59 : f32 to vector<16x32xf32>
    %185 = arith.mulf %184, %183 : vector<16x32xf32>
    %cst_60 = arith.constant 0.707106769 : f32
    %186 = vector.broadcast %cst_60 : f32 to vector<16x32xf32>
    %187 = arith.mulf %183, %186 : vector<16x32xf32>
    %cst_61 = arith.constant 0.000000e+00 : f32
    %188 = vector.broadcast %cst_61 : f32 to vector<16x32xf32>
    %189 = arith.cmpf oge, %187, %188 : vector<16x32xf32>
    %cst_62 = arith.constant 0.000000e+00 : f32
    %190 = vector.broadcast %cst_62 : f32 to vector<16x32xf32>
    %191 = arith.subf %190, %187 : vector<16x32xf32>
    %192 = arith.select %189, %187, %191 : vector<16x32xi1>, vector<16x32xf32>
    %cst_63 = arith.constant 0.327591091 : f32
    %193 = vector.broadcast %cst_63 : f32 to vector<16x32xf32>
    %194 = arith.mulf %193, %192 : vector<16x32xf32>
    %cst_64 = arith.constant 1.000000e+00 : f32
    %195 = vector.broadcast %cst_64 : f32 to vector<16x32xf32>
    %196 = arith.addf %195, %194 : vector<16x32xf32>
    %cst_65 = arith.constant 1.000000e+00 : f32
    %197 = vector.broadcast %cst_65 : f32 to vector<16x32xf32>
    %198 = arith.divf %197, %196 : vector<16x32xf32>
    %cst_66 = arith.constant 1.06140542 : f32
    %199 = vector.broadcast %cst_66 : f32 to vector<16x32xf32>
    %200 = arith.mulf %199, %198 : vector<16x32xf32>
    %cst_67 = arith.constant -1.45315206 : f32
    %201 = vector.broadcast %cst_67 : f32 to vector<16x32xf32>
    %202 = arith.addf %200, %201 : vector<16x32xf32>
    %203 = arith.mulf %202, %198 : vector<16x32xf32>
    %cst_68 = arith.constant 1.42141378 : f32
    %204 = vector.broadcast %cst_68 : f32 to vector<16x32xf32>
    %205 = arith.addf %203, %204 : vector<16x32xf32>
    %206 = arith.mulf %205, %198 : vector<16x32xf32>
    %cst_69 = arith.constant -0.284496725 : f32
    %207 = vector.broadcast %cst_69 : f32 to vector<16x32xf32>
    %208 = arith.addf %206, %207 : vector<16x32xf32>
    %209 = arith.mulf %208, %198 : vector<16x32xf32>
    %cst_70 = arith.constant 0.254829586 : f32
    %210 = vector.broadcast %cst_70 : f32 to vector<16x32xf32>
    %211 = arith.addf %209, %210 : vector<16x32xf32>
    %212 = arith.mulf %211, %198 : vector<16x32xf32>
    %cst_71 = arith.constant 0.000000e+00 : f32
    %213 = vector.broadcast %cst_71 : f32 to vector<16x32xf32>
    %214 = arith.subf %213, %192 : vector<16x32xf32>
    %215 = arith.mulf %214, %192 : vector<16x32xf32>
    %216 = math.exp %215 : vector<16x32xf32>
    %217 = arith.mulf %212, %216 : vector<16x32xf32>
    %cst_72 = arith.constant 1.000000e+00 : f32
    %218 = vector.broadcast %cst_72 : f32 to vector<16x32xf32>
    %219 = arith.subf %218, %217 : vector<16x32xf32>
    %cst_73 = arith.constant 0.000000e+00 : f32
    %220 = vector.broadcast %cst_73 : f32 to vector<16x32xf32>
    %221 = arith.cmpf oge, %187, %220 : vector<16x32xf32>
    %cst_74 = arith.constant 0.000000e+00 : f32
    %222 = vector.broadcast %cst_74 : f32 to vector<16x32xf32>
    %223 = arith.subf %222, %219 : vector<16x32xf32>
    %224 = arith.select %221, %219, %223 : vector<16x32xi1>, vector<16x32xf32>
    %cst_75 = arith.constant 1.000000e+00 : f32
    %225 = vector.broadcast %cst_75 : f32 to vector<16x32xf32>
    %226 = arith.addf %225, %224 : vector<16x32xf32>
    %227 = arith.mulf %185, %226 : vector<16x32xf32>
    %c184 = arith.constant 184 : index
    %c0_76 = arith.constant 0 : index
    %228 = vector.load %arg2[%c184, %c0_76] : memref<312x256xf32, #tpu.memory_space<vmem>>, vector<32x32xf32>
    %cst_77 = arith.constant dense<0.000000e+00> : vector<16x32xf32>
    %229 = tpu.matmul %227, %228, %cst_77 {dimension_numbers = #tpu.dot_dimension_numbers<[1], [0], [0], [1], [0, 0, 1, 1], [], []>} : vector<16x32xf32>, vector<32x32xf32>, vector<16x32xf32> -> vector<16x32xf32>
    %c216 = arith.constant 216 : index
    %c0_78 = arith.constant 0 : index
    %230 = vector.load %arg2[%c216, %c0_78] : memref<312x256xf32, #tpu.memory_space<vmem>>, vector<1x32xf32>
    %231 = vector.broadcast %230 : vector<1x32xf32> to vector<16x32xf32>
    %232 = arith.addf %229, %231 : vector<16x32xf32>
    %c224 = arith.constant 224 : index
    %c0_79 = arith.constant 0 : index
    %233 = vector.load %arg2[%c224, %c0_79] : memref<312x256xf32, #tpu.memory_space<vmem>>, vector<1x32xf32>
    %234 = vector.broadcast %233 : vector<1x32xf32> to vector<16x32xf32>
    %235 = arith.mulf %234, %232 : vector<16x32xf32>
    %cst_80 = arith.constant 1.000000e+00 : f32
    %236 = vector.broadcast %cst_80 : f32 to vector<1x32xf32>
    %237 = arith.subf %236, %233 : vector<1x32xf32>
    %238 = vector.broadcast %237 : vector<1x32xf32> to vector<16x32xf32>
    %239 = arith.mulf %238, %14 : vector<16x32xf32>
    %240 = arith.addf %235, %239 : vector<16x32xf32>
    %cst_81 = arith.constant 0.000000e+00 : f32
    %241 = vector.broadcast %cst_81 : f32 to vector<16x32xf32>
    %242 = arith.maximumf %240, %241 : vector<16x32xf32>
    %c232 = arith.constant 232 : index
    %c0_82 = arith.constant 0 : index
    %243 = vector.load %arg2[%c232, %c0_82] : memref<312x256xf32, #tpu.memory_space<vmem>>, vector<32x32xf32>
    %cst_83 = arith.constant dense<0.000000e+00> : vector<16x32xf32>
    %244 = tpu.matmul %242, %243, %cst_83 {dimension_numbers = #tpu.dot_dimension_numbers<[1], [0], [0], [1], [0, 0, 1, 1], [], []>} : vector<16x32xf32>, vector<32x32xf32>, vector<16x32xf32> -> vector<16x32xf32>
    %c264 = arith.constant 264 : index
    %c0_84 = arith.constant 0 : index
    %245 = vector.load %arg2[%c264, %c0_84] : memref<312x256xf32, #tpu.memory_space<vmem>>, vector<1x32xf32>
    %246 = vector.broadcast %245 : vector<1x32xf32> to vector<16x32xf32>
    %247 = arith.addf %244, %246 : vector<16x32xf32>
    %cst_85 = arith.constant 0.000000e+00 : f32
    %248 = vector.broadcast %cst_85 : f32 to vector<16x32xf32>
    %249 = arith.maximumf %247, %248 : vector<16x32xf32>
    %c272 = arith.constant 272 : index
    %c0_86 = arith.constant 0 : index
    %250 = vector.load %arg2[%c272, %c0_86] : memref<312x256xf32, #tpu.memory_space<vmem>>, vector<32x128xf32>
    %cst_87 = arith.constant dense<0.000000e+00> : vector<16x128xf32>
    %251 = tpu.matmul %249, %250, %cst_87 {dimension_numbers = #tpu.dot_dimension_numbers<[1], [0], [0], [1], [0, 0, 1, 1], [], []>} : vector<16x32xf32>, vector<32x128xf32>, vector<16x128xf32> -> vector<16x128xf32>
    %c304 = arith.constant 304 : index
    %c0_88 = arith.constant 0 : index
    %252 = vector.load %arg2[%c304, %c0_88] : memref<312x256xf32, #tpu.memory_space<vmem>>, vector<1x128xf32>
    %253 = vector.broadcast %252 : vector<1x128xf32> to vector<16x128xf32>
    %254 = arith.addf %251, %253 : vector<16x128xf32>
    %c0_89 = arith.constant 0 : index
    %c0_90 = arith.constant 0 : index
    %255 = vector.load %arg3[%c0_89, %c0_90] : memref<16x128xf32, #tpu.memory_space<vmem>>, vector<16x128xf32>
    tpu.vector_store %arg3[%c0_89, %c0_90], %254 {strides = array<i32>} : memref<16x128xf32, #tpu.memory_space<vmem>>, vector<16x128xf32>,
    return
  }
}

</mosaic_0001>

<bundles_post_ra>
// kernel: hgt_forward.1
= control target key start
LH: loop header
LB: loop body
LE: loop exit
PB: predicated region body
PF: predicated region fallthrough
CT: control target
= control target key end

     0   :  { %vm28_vm0 = vcmask 1041408   ;;  %vm21_vm1 = vcmask 211968   ;;  %vm3044_vm2 = vmmov 1   ;;  %vm122_vm4 = vcmask 785408   ;;  %s3046_s15 = smov 80   ;;  %s3047_s16 = smov 96   ;;  %s3591_s2 = inlined_call_operand.vmem [shape: f32[312,256], index: 2, kind: input, shape index: {}]   ;;  %s3592_s0 = inlined_call_operand.vmem [shape: f32[16,26], index: 0, kind: input, shape index: {}]   ;;  %s3593_s1 = inlined_call_operand.vmem [shape: f32[2,16,16], index: 1, kind: input, shape index: {}]   ;;  %s3594_s3 = inlined_call_operand.vmem [shape: f32[16,128], index: 3, kind: output, shape index: {}]  }
   0x1   :  { %v16_v0 = vld [vmem:[%s3591_s2] sm:$0xff]  ;;  %v17_v1 = vld [vmem:[%s3591_s2 + $0x10] sm:$0xff]  ;;  %vm3096_vm3 = vmpackc.low %vm28_vm0, %vm3044_vm2  ;;  %v3045_v46 = vmov 0.0   ;;  %vm227_vm5 = vcmask 261120   ;;  %v217_v54 = vlaneseq  ;;  %vm319_vm6 = vcmask 64512   ;;  %s3049_s17 = smov 88  }
   0x2   :  { %v18_v2 = vld [vmem:[%s3591_s2 + $0x20] sm:$0xff]  ;;  %v2758_v3 = vpack.c.bf16 %v17_v1, %v16_v0  ;;  %v19_v4 = vld [vmem:[%s3591_s2 + $0x30] sm:$0x3]  ;;  %v15_v17 = vld [vmem:[%s3592_s0 + $0x8] sm:$0xff]  ;;  %s3050_s18 = smov 120   ;;  %s3051_s19 = smov 112  }
   0x3   :  { %v14_v5 = vld [vmem:[%s3592_s0] sm:$0xff]  ;;  %v2762_v6 = vpack.c.bf16 %v19_v4, %v18_v2  ;;  %v109_v8 = vld [vmem:[%s3591_s2 + $0x50] sm:$0xff]  ;;  %v207_v27 = vld [vmem:[%s3591_s2 + $0x128] sm:$0xff]  ;;  %v218_v55 = vshrl.u32 %v217_v54, 7  ;;  %s3048_s0 = smov 72   ;;  %s3052_s20 = smov 104  }
   0x4   :  { %2583 = vmatprep.mubr.msk.f32.mxu0 %vm21_vm1, %v14_v5  ;;  %v110_v9 = vld [vmem:[%s3591_s2 + $0x60] sm:$0xff]  ;;  %2759 = vmatprep.subr.bf16.mxu0 %v2758_v3  ;;  %v111_v11 = vld [vmem:[%s3591_s2 + $0x70] sm:$0xff]  ;;  %v209_v28 = vld [vmem:[%s3591_s2 + $0x138] sm:$0xff]  ;;  %s3053_s21 = smov 32   ;;  %s3054_s22 = smov 16   ;;  %vm700_vm8 = vcmask 130048  }
   0x5   :  { %v2768_v10 = vpack.c.bf16 %v110_v9, %v109_v8  ;;  %v112_v12 = vld [vmem:[%s3591_s2 + $0x80] sm:$0xff]  ;;  %2761 = vmatpush3.bf16.msra.mxu0 %v2758_v3  ;;  %v113_v14 = vld [vmem:[%s3591_s2 + $0x90] sm:$0xff]  ;;  %v2792_v30 = vpack.c.bf16 %v209_v28, %v207_v27  ;;  %v211_v40 = vld [vmem:[%s3591_s2 + $0x148] sm:$0xff]  ;;  %v219_v56 = vsub.s32 0, %v218_v55  ;;  %v223_v60 = vsub.s32 1, %v218_v55  ;;  %s3055_s23 = smov 48  }
   0x6   :  { %v2772_v13 = vpack.c.bf16 %v112_v12, %v111_v11  ;;  %v114_v15 = vld [vmem:[%s3591_s2 + $0xa0] sm:$0xff]  ;;  %2764 = vmatprep.subr.msk.bf16.mxu0 %vm3096_vm3, %v2762_v6  ;;  %v115_v18 = vld [vmem:[%s3591_s2 + $0xb0] sm:$0xff]  ;;  %v213_v41 = vld [vmem:[%s3591_s2 + $0x158] sm:$0xff]  ;;  %vm705_vm9 = vcmask 392192   ;;  %vm734_vm10 = vcmask 523264   ;;  %s3056_s28 = smov 24  }
   0x7   :  { %2769 = vmatprep.subr.bf16.mxu1 %v2768_v10  ;;  %v2776_v16 = vpack.c.bf16 %v114_v15, %v113_v14  ;;  %v116_v19 = vld [vmem:[%s3591_s2 + $0xc0] sm:$0xff]  ;;  %v117_v21 = vld [vmem:[%s3591_s2 + $0xd0] sm:$0xff]  ;;  %v2796_v42 = vpack.c.bf16 %v213_v41, %v211_v40  ;;  %vm3224_vm7 = vmpackc.low %vm319_vm6, %vm319_vm6  ;;  %s3057_s29 = smov 8   ;;  %s3058_s30 = smov 64   ;;  %vm1209_vm11 = vcmask 195584  }
   0x8   :  { %2771 = vmatpush3.bf16.msra.mxu1 %v2768_v10  ;;  %v2780_v20 = vpack.c.bf16 %v116_v19, %v115_v18  ;;  %v118_v22 = vld [vmem:[%s3591_s2 + $0xe0] sm:$0xff]  ;;  %v119_v24 = vld [vmem:[%s3591_s2 + $0xf0] sm:$0xff]  ;;  %s3059_s4 = smov 56   ;;  %s3060_s5 = smov 40  }
   0x9   :  { %2773 = vmatprep.subr.bf16.mxu1 %v2772_v13  ;;  %2767 = vmatpush3.bf16.msk.msra.mxu0 %vm3096_vm3, %v2762_v6  ;;  %v2784_v23 = vpack.c.bf16 %v118_v22, %v117_v21  ;;  %v120_v25 = vld [vmem:[%s3591_s2 + $0x100] sm:$0xff]  ;;  %v208_v31 = vld [vmem:[%s3591_s2 + $0x130] sm:$0xff] }
   0xa   :  { %v2788_v26 = vpack.c.bf16 %v120_v25, %v119_v24  ;;  %v206_v29 = vld [vmem:[%s3591_s2 + $0x120] sm:$0xff]  ;;  %2793 = vmatprep.subr.bf16.mxu0 %v2792_v30  ;;  %v212_v44 = vld [vmem:[%s3591_s2 + $0x150] sm:$0xff] }
   0xb   :  { %v2794_v32 = vpack.c.bf16 %v208_v31, %v206_v29  ;;  %v20_v33 = vld [vmem:[%s3591_s2 + $0x40] ss:$0 sm:$0xff]  ;;  %v121_v47 = vld [vmem:[%s3591_s2 + $0x110] ss:$0 sm:$0xff] }
   0xc   :  { %2775 = vmatpush3.bf16.msra.mxu1 %v2772_v13  ;;  %2584 = vmatmul.mubr.msk.f32.vlgmr.msra.gmra.mrb[0].mxu0 %vm21_vm1, %v15_v17  ;;  %v210_v43 = vld [vmem:[%s3591_s2 + $0x140] sm:$0xff] }
   0xd   :  { %2777 = vmatprep.subr.bf16.mxu1 %v2776_v16  ;;  %2795 = vmatpush1.bf16.msra.mxu0 %v2794_v32  ;;  %v2798_v45 = vpack.c.bf16 %v212_v44, %v210_v43  ;;  %v2414_v57 = vld [vmem:[%s3591_s2 + $0x160] ss:$8 sm:$0x3] }
   0xe   :  { %2797 = vmatprep.subr.bf16.mxu0 %v2796_v42  ;;  %298 = vmatprep.mubr.f32.mxu0 %v3045_v46  ;;  %v220_v58 = vrot.slane %v2414_v57, %v219_v56  ;;  %v224_v63 = vrot.slane %v2414_v57, %v223_v60  ;;  %v311_v40 = vld [vmem:[%s3593_s1] sm:$0xff] }
  0x10   :  { %2779 = vmatpush3.bf16.msra.mxu1 %v2776_v16 }
  0x11   :  { %2781 = vmatprep.subr.bf16.mxu1 %v2780_v20  ;;  %2799 = vmatpush1.bf16.msra.mxu0 %v2798_v45 }
  0x14   :  { %2783 = vmatpush3.bf16.msra.mxu1 %v2780_v20 }
  0x15   :  { %2785 = vmatprep.subr.bf16.mxu1 %v2784_v23 }
  0x18   :  { %2787 = vmatpush3.bf16.msra.mxu1 %v2784_v23 }
  0x19   :  { %2789 = vmatprep.subr.bf16.mxu1 %v2788_v26 }
  0x1c   :  { %2791 = vmatpush3.bf16.msra.mxu1 %v2788_v26 }
  0xdf   :  { %v2585_v34 = vpop.f32.mrb[0].mxu0 }
  0xe0   :  { %v104_v35 = vadd.f32 %v2585_v34, %v20_v33  ;;  %v98_v36 = vpop.f32.mrb[1].mxu0 }
  0xe1   :  { %v99_v37 = vadd.f32 %v98_v36, %v20_v33 }
  0xe2   :  { %v108_v39 = vmax.f32 %v104_v35, 0.0 }
  0xe3   :  { %v107_v38 = vmax.f32 %v99_v37, 0.0 }
  0xe5   :  { %2610 = vmatprep.mubr.msk.f32.mxu1 %vm122_vm4, %v107_v38 }
  0xe6   :  { %2611 = vmatmul.mubr.msk.f32.vlgmr.msra.gmra.mrb[0].mxu1 %vm122_vm4, %v108_v39  ;;  %v312_v39 = vld [vmem:[%s3593_s1 + $0x8] sm:$0xff] }
 0x1b9   :  { %v2612_v48 = vpop.f32.mrb[0].mxu1 }
 0x1ba   :  { %v195_v49 = vpop.f32.mrb[1].mxu1  ;;  %v3177_v51 = vadd.f32 %v2612_v48, %v121_v47 }
 0x1bb   :  { %v3175_v50 = vadd.f32 %v195_v49, %v121_v47 }
 0x1bc   :  { %v205_v53 = vmax.f32 %v3177_v51, 0.0  ;;  %v2320_v51 = vld [vmem:[%s3591_s2 + $0x250] sm:$0xff] }
 0x1bd   :  { %v204_v52 = vmax.f32 %v3175_v50, 0.0  ;;  %v2233_v50 = vld [vmem:[%s3591_s2 + $0x210] ss:$0 sm:$0xff] }
 0x1bf   :  { %2415 = vmatmul.mubr.msk.f32.vlgmr.msra.gmra.mrb[2].mxu0 %vm227_vm5, %v204_v52 }
 0x1c0   :  { %304 = vmatprep.mubr.f32.mxu0 %v3045_v46 }
 0x1c3   :  { %2416 = vmatmul.mubr.msk.f32.gmra.mrb[4].mxu0 %vm227_vm5, %v205_v53 }
 0x292   :  { %v300_v59 = vpop.f32.mrb[2].mxu0 }
 0x293   :  { %v3190_v61 = vadd.f32 %v300_v59, %v220_v58  ;;  %v302_v62 = vpop.f32.mrb[3].mxu0 }
 0x294   :  { %v303_v5 = vadd.f32 %v302_v62, %v224_v63 }
 0x295   :  { %2617 = vmatprep.mubr.msk.f32.mxu0 %vm319_vm6, %v3190_v61 }
 0x296   :  { %v306_v0 = vpop.f32.mrb[4].mxu0 }
 0x297   :  { %v3194_v1 = vadd.f32 %v306_v0, %v220_v58  ;;  %v308_v2 = vpop.f32.mrb[5].mxu0 }
 0x298   :  { %v309_v3 = vadd.f32 %v308_v2, %v224_v63 }
 0x299   :  { %v3198_v4 = vpack.i.bf16 %v3194_v1, %v3190_v61 }
 0x29a   :  { %v3204_v6 = vpack.c.bf16 %v309_v3, %v303_v5  ;;  %v3206_v7 = vpack.i.bf16 %v309_v3, %v303_v5 }
 0x29b   :  { %2932 = vrot.lane.b32.xlu1 %v3198_v4, %s3046_s15  ;;  %2922 = vrot.lane.b32.xlu0 %v3198_v4, %s3047_s16 }
 0x29f   :  { %2937 = vrot.lane.b32.xlu1 %v3198_v4, %s3048_s0  ;;  %2927 = vrot.lane.b32.xlu0 %v3198_v4, %s3049_s17 }
 0x2a3   :  { %405 = vrot.lane.b32.xlu1 %v3194_v1, %s3050_s18  ;;  %403 = vrot.lane.b32.xlu0 %v3190_v61, %s3050_s18 }
 0x2a7   :  { %496 = vrot.lane.b32.xlu1 %v3194_v1, %s3051_s19  ;;  %494 = vrot.lane.b32.xlu0 %v3190_v61, %s3051_s19 }
 0x2ab   :  { %587 = vrot.lane.b32.xlu1 %v3194_v1, %s3052_s20  ;;  %585 = vrot.lane.b32.xlu0 %v3190_v61, %s3052_s20 }
 0x30d   :  { %v2933_v8 = vpop.permute.xlu1 %2932  ;;  %v2923_v9 = vpop.permute.xlu0 %2922 }
 0x30e   :  { %v2935_v10 = vunpack.i.h.bf16 %v2933_v8  ;;  %v2934_v11 = vunpack.i.l.bf16 %v2933_v8  ;;  %v2925_v12 = vunpack.i.h.bf16 %v2923_v9  ;;  %v2924_v13 = vunpack.i.l.bf16 %v2923_v9 }
 0x310   :  { %v2812_v15 = vpack.c.bf16 %v2935_v10, %v2934_v11  ;;  %v2800_v16 = vpack.c.bf16 %v2925_v12, %v2924_v13 }
 0x311   :  { %v2938_v17 = vpop.permute.xlu1 %2937  ;;  %v2928_v18 = vpop.permute.xlu0 %2927 }
 0x312   :  { %v2930_v19 = vunpack.i.h.bf16 %v2928_v18  ;;  %v2929_v20 = vunpack.i.l.bf16 %v2928_v18  ;;  %2802 = vmatprep.subr.msk.bf16.mxu0 %vm3224_vm7, %v2800_v16  ;;  %2814 = vmatprep.subr.msk.bf16.mxu1 %vm3224_vm7, %v2812_v15  ;;  %v2940_v24 = vunpack.i.h.bf16 %v2938_v17  ;;  %v2939_v25 = vunpack.i.l.bf16 %v2938_v17 }
 0x313   :  { %2805 = vmatpush3.bf16.xpose.msk.msra.mxu0 %vm3224_vm7, %v2800_v16  ;;  %2817 = vmatpush3.bf16.xpose.msk.msra.mxu1 %vm3224_vm7, %v2812_v15 }
 0x314   :  { %v2806_v21 = vpack.c.bf16 %v2930_v19, %v2929_v20  ;;  %v2818_v28 = vpack.c.bf16 %v2940_v24, %v2939_v25 }
 0x315   :  { %v3236_v22 = vpop.permute.xlu1 %405  ;;  %v3238_v23 = vpop.permute.xlu0 %403 }
 0x316   :  { %2808 = vmatprep.subr.msk.bf16.mxu0 %vm3224_vm7, %v2806_v21 }
 0x319   :  { %v3242_v26 = vpop.permute.xlu1 %496  ;;  %v3244_v27 = vpop.permute.xlu0 %494 }
 0x31a   :  { %2618 = vmatmul.mubr.msk.f32.vlgmr.msra.gmra.mrb[6].mxu0 %vm319_vm6, %v3194_v1  ;;  %2631 = vmatprep.mubr.msk.f32.mxu1 %vm319_vm6, %v3244_v27 }
 0x31b   :  { %2811 = vmatpush3.bf16.xpose.msk.msra.mxu0 %vm3224_vm7, %v2806_v21  ;;  %2624 = vmatprep.mubr.msk.f32.mxu0 %vm319_vm6, %v3238_v23 }
 0x31c   :  { %2632 = vmatmul.mubr.msk.f32.vlgmr.msra.gmra.mrb[2].mxu1 %vm319_vm6, %v3242_v26  ;;  %2820 = vmatprep.subr.msk.bf16.mxu0 %vm3224_vm7, %v2818_v28 }
 0x31d   :  { %v3258_v29 = vpop.permute.xlu0 %585  ;;  %v3266_v30 = vpop.permute.xlu1 %587 }
 0x322   :  { %2625 = vmatmul.mubr.msk.f32.vlgmr.msra.gmra.mrb[8].mxu0 %vm319_vm6, %v3236_v22 }
 0x323   :  { %2823 = vmatpush3.bf16.xpose.msk.msra.mxu0 %vm3224_vm7, %v2818_v28  ;;  %2638 = vmatprep.mubr.msk.f32.mxu0 %vm319_vm6, %v3258_v29 }
 0x32a   :  { %2639 = vmatmul.mubr.msk.f32.vlgmr.msra.gmra.mrb[10].mxu0 %vm319_vm6, %v3266_v30 }
 0x32b   :  { %2673 = vmatprep.mubr.msk.f32.mxu0 %vm319_vm6, %v3190_v61 }
 0x3ed   :  { %v2619_v31 = vpop.f32.mrb[6].mxu0 }
 0x3ee   :  { %v394_v32 = vpop.f32.mrb[7].mxu0 }
 0x3ef   :  { %v2633_v33 = vpop.f32.mrb[2].mxu1 }
 0x3f0   :  { %688 = vrot.lane.b32.xlu1 %v2633_v33, %s3053_s21  ;;  %v576_v34 = vpop.f32.mrb[3].mxu1 }
 0x3f1   :  { %686 = vrot.lane.b32.xlu0 %v576_v34, %s3053_s21 }
 0x3f5   :  { %v2626_v35 = vpop.f32.mrb[8].mxu0 }
 0x3f6   :  { %680 = vrot.lane.b32.xlu1 %v2626_v35, %s3054_s22  ;;  %v485_v36 = vpop.f32.mrb[9].mxu0 }
 0x3f7   :  { %678 = vrot.lane.b32.xlu0 %v485_v36, %s3054_s22 }
 0x3fd   :  { %v2640_v37 = vpop.f32.mrb[10].mxu0 }
 0x3fe   :  { %696 = vrot.lane.b32.xlu1 %v2640_v37, %s3055_s23  ;;  %v667_v38 = vpop.f32.mrb[11].mxu0 }
 0x3ff   :  { %694 = vrot.lane.b32.xlu0 %v667_v38, %s3055_s23 }
 0x402   :  { %712 = vrot.lane.b32.xlu1 %v312_v39, %s3054_s22 }
 0x403   :  { %710 = vrot.lane.b32.xlu0 %v311_v40, %s3054_s22 }
 0x406   :  { %718 = vrot.lane.b32.xlu1 %v312_v39, %s3053_s21 }
 0x407   :  { %716 = vrot.lane.b32.xlu0 %v311_v40, %s3053_s21 }
 0x462   :  { %v689_v41 = vpop.permute.xlu1 %688 }
 0x463   :  { %v687_v42 = vpop.permute.xlu0 %686 }
 0x468   :  { %v681_v43 = vpop.permute.xlu1 %680 }
 0x469   :  { %v679_v44 = vpop.permute.xlu0 %678  ;;  %v702_v45 = vsel %vm700_vm8, %v2619_v31, %v681_v43 }
 0x46a   :  { %v701_v46 = vsel %vm700_vm8, %v394_v32, %v679_v44  ;;  %v704_v48 = vsel %vm227_vm5, %v702_v45, %v689_v41 }
 0x46b   :  { %v703_v55 = vsel %vm227_vm5, %v701_v46, %v687_v42 }
 0x470   :  { %v697_v47 = vpop.permute.xlu1 %696 }
 0x471   :  { %v695_v49 = vpop.permute.xlu0 %694  ;;  %v707_v54 = vsel %vm705_vm9, %v704_v48, %v697_v47 }
 0x472   :  { %v738_v56 = vsel %vm734_vm10, %v707_v54, -inf  ;;  %v706_v57 = vsel %vm705_vm9, %v703_v55, %v695_v49 }
 0x473   :  { %739 = vmax.xlane.f32.xlu1 %v738_v56  ;;  %v735_v58 = vsel %vm734_vm10, %v706_v57, -inf }
 0x474   :  { %736 = vmax.xlane.f32.xlu0 %v735_v58  ;;  %v713_v59 = vpop.permute.xlu1 %712 }
 0x475   :  { %v711_v60 = vpop.permute.xlu0 %710  ;;  %v729_v18 = vsel %vm700_vm8, %v312_v39, %v713_v59 }
 0x476   :  { %v728_v19 = vsel %vm700_vm8, %v311_v40, %v711_v60 }
 0x478   :  { %v719_v61 = vpop.permute.xlu1 %718 }
 0x479   :  { %v717_v62 = vpop.permute.xlu0 %716  ;;  %v731_v24 = vsel %vm227_vm5, %v729_v18, %v719_v61  ;;  %v2441_v18 = vld [vmem:[%s3593_s1 + $0x10] sm:$0xff] }
 0x47a   :  { %v730_v31 = vsel %vm227_vm5, %v728_v19, %v717_v62 }
 0x484   :  { %724 = vrot.lane.b32.xlu1 %v312_v39, %s3055_s23 }
 0x488   :  { %2947 = vrot.lane.b32.xlu1 %v3198_v4, %s3056_s28 }
 0x48a   :  { %722 = vrot.lane.b32.xlu0 %v311_v40, %s3055_s23 }
 0x48e   :  { %2942 = vrot.lane.b32.xlu0 %v3198_v4, %s3053_s21 }
 0x492   :  { %2952 = vrot.lane.b32.xlu0 %v3198_v4, %s3054_s22 }
 0x500   :  { %v740_v63 = vpop.xlane.xlu1 %739 }
 0x501   :  { %v742_v0 = vsub.f32 %v707_v54, %v740_v63  ;;  %v737_v2 = vpop.xlane.xlu0 %736 }
 0x502   :  { %v741_v3 = vsub.f32 %v706_v57, %v737_v2 }
 0x503   :  { %v745_v5 = vmul.f32 1.442695, %v742_v0 }
 0x504   :  { %v743_v8 = vmul.f32 1.442695, %v741_v3  ;;  %v725_v9 = vpop.permute.xlu1 %724 }
 0x505   :  { %2996 = vpow2.f32 %v745_v5  ;;  %v723_v10 = vpop.permute.xlu0 %722  ;;  %v733_v32 = vsel %vm705_vm9, %v731_v24, %v725_v9 }
 0x506   :  { %2998 = vpow2.f32 %v743_v8  ;;  %v732_v35 = vsel %vm705_vm9, %v730_v31, %v723_v10 }
 0x508   :  { %v2948_v11 = vpop.permute.xlu1 %2947 }
 0x509   :  { %v2943_v12 = vpop.permute.xlu0 %2942  ;;  %v2950_v13 = vunpack.i.h.bf16 %v2948_v11  ;;  %v2949_v15 = vunpack.i.l.bf16 %v2948_v11 }
 0x50a   :  { %v2945_v16 = vunpack.i.h.bf16 %v2943_v12  ;;  %v2944_v17 = vunpack.i.l.bf16 %v2943_v12 }
 0x50b   :  { %v2828_v25 = vpack.c.bf16 %v2950_v13, %v2949_v15 }
 0x50c   :  { %v2824_v20 = vpack.c.bf16 %v2945_v16, %v2944_v17  ;;  %v2442_v17 = vld [vmem:[%s3593_s1 + $0x18] sm:$0xff] }
 0x50d   :  { %v2953_v21 = vpop.permute.xlu0 %2952 }
 0x50e   :  { %2825 = vmatprep.subr.bf16.mxu1 %v2824_v20  ;;  %v2955_v36 = vunpack.i.h.bf16 %v2953_v21  ;;  %v2954_v37 = vunpack.i.l.bf16 %v2953_v21 }
 0x50f   :  { %v2997_v28 = vpop.eup %2996  ;;  %2827 = vmatpush3.bf16.msra.mxu1 %v2824_v20 }
 0x510   :  { %v2999_v33 = vpop.eup %2998  ;;  %v3309_v34 = vmul.f32 %v2997_v28, %v733_v32  ;;  %2829 = vmatprep.subr.bf16.mxu1 %v2828_v25  ;;  %v2832_v39 = vpack.c.bf16 %v2955_v36, %v2954_v37 }
 0x511   :  { %v3312_v38 = vmul.f32 %v2999_v33, %v732_v35 }
 0x512   :  { %856 = vrot.lane.b32.xlu0 %v3309_v34, %s3051_s19 }
 0x513   :  { %854 = vrot.lane.b32.xlu1 %v3312_v38, %s3051_s19  ;;  %2645 = vmatprep.mubr.msk.f32.mxu1 %vm700_vm8, %v3312_v38 }
 0x514   :  { %2646 = vmatmul.mubr.msk.f32.vlgmr.msra.gmra.mrb[4].mxu1 %vm700_vm8, %v3309_v34 }
 0x515   :  { %2831 = vmatpush3.bf16.msra.mxu1 %v2828_v25 }
 0x516   :  { %2833 = vmatprep.subr.bf16.mxu1 %v2832_v39  ;;  %963 = vrot.lane.b32.xlu0 %v3312_v38, %s3047_s16 }
 0x517   :  { %2957 = vrot.lane.b32.xlu1 %v3198_v4, %s3057_s29 }
 0x51a   :  { %2962 = vrot.lane.b32.xlu0 %v3198_v4, %s3058_s30 }
 0x51b   :  { %965 = vrot.lane.b32.xlu1 %v3309_v34, %s3047_s16 }
 0x51e   :  { %1072 = vrot.lane.b32.xlu0 %v3312_v38, %s3046_s15 }
 0x51f   :  { %2967 = vrot.lane.b32.xlu1 %v3198_v4, %s3059_s4 }
 0x522   :  { %2972 = vrot.lane.b32.xlu0 %v3198_v4, %s3055_s23 }
 0x523   :  { %1074 = vrot.lane.b32.xlu1 %v3309_v34, %s3046_s15 }
 0x527   :  { %2977 = vrot.lane.b32.xlu1 %v3198_v4, %s3060_s5 }
 0x584   :  { %v3337_v40 = vpop.permute.xlu0 %856 }
 0x585   :  { %v3339_v41 = vpop.permute.xlu1 %854 }
 0x586   :  { %2652 = vmatprep.mubr.msk.f32.mxu1 %vm700_vm8, %v3339_v41 }
 0x587   :  { %2653 = vmatmul.mubr.msk.f32.vlgmr.msra.gmra.mrb[6].mxu1 %vm700_vm8, %v3337_v40 }
 0x588   :  { %2835 = vmatpush3.bf16.msra.mxu1 %v2832_v39  ;;  %v3345_v42 = vpop.permute.xlu0 %963 }
 0x589   :  { %v2958_v43 = vpop.permute.xlu1 %2957  ;;  %2659 = vmatprep.mubr.msk.f32.mxu1 %vm700_vm8, %v3345_v42 }
 0x58a   :  { %v2960_v44 = vunpack.i.h.bf16 %v2958_v43  ;;  %v2959_v45 = vunpack.i.l.bf16 %v2958_v43 }
 0x58c   :  { %v2836_v4 = vpack.c.bf16 %v2960_v44, %v2959_v45  ;;  %v2963_v46 = vpop.permute.xlu0 %2962 }
 0x58d   :  { %v2965_v47 = vunpack.i.h.bf16 %v2963_v46  ;;  %v2964_v48 = vunpack.i.l.bf16 %v2963_v46  ;;  %v3349_v49 = vpop.permute.xlu1 %965 }
 0x58e   :  { %2660 = vmatmul.mubr.msk.f32.vlgmr.msra.gmra.mrb[8].mxu1 %vm700_vm8, %v3349_v49  ;;  %2837 = vmatprep.subr.bf16.mxu1 %v2836_v4 }
 0x58f   :  { %v2840_v54 = vpack.c.bf16 %v2965_v47, %v2964_v48  ;;  %2839 = vmatpush3.bf16.msra.mxu1 %v2836_v4 }
 0x590   :  { %v3353_v55 = vpop.permute.xlu0 %1072 }
 0x591   :  { %v2968_v56 = vpop.permute.xlu1 %2967  ;;  %2666 = vmatprep.mubr.msk.f32.mxu1 %vm700_vm8, %v3353_v55  ;;  %2842 = vmatprep.subr.msk.bf16.mxu0 %vm3224_vm7, %v2840_v54 }
 0x592   :  { %v2970_v57 = vunpack.i.h.bf16 %v2968_v56  ;;  %v2969_v58 = vunpack.i.l.bf16 %v2968_v56  ;;  %2845 = vmatpush3.bf16.xpose.msk.msra.mxu0 %vm3224_vm7, %v2840_v54 }
 0x594   :  { %v2846_v59 = vpack.c.bf16 %v2970_v57, %v2969_v58  ;;  %v2973_v60 = vpop.permute.xlu0 %2972 }
 0x595   :  { %v2975_v61 = vunpack.i.h.bf16 %v2973_v60  ;;  %v2974_v62 = vunpack.i.l.bf16 %v2973_v60  ;;  %v3361_v63 = vpop.permute.xlu1 %1074 }
 0x596   :  { %2667 = vmatmul.mubr.msk.f32.vlgmr.msra.gmra.mrb[10].mxu1 %vm700_vm8, %v3361_v63  ;;  %2848 = vmatprep.subr.msk.bf16.mxu1 %vm3224_vm7, %v2846_v59 }
 0x597   :  { %v2852_v0 = vpack.c.bf16 %v2975_v61, %v2974_v62  ;;  %2680 = vmatprep.mubr.msk.f32.mxu1 %vm319_vm6, %v3238_v23 }
 0x598   :  { %2851 = vmatpush3.bf16.xpose.msk.msra.mxu1 %vm3224_vm7, %v2846_v59 }
 0x599   :  { %v2978_v2 = vpop.permute.xlu1 %2977  ;;  %2674 = vmatmul.mubr.msk.f32.vlgmr.msra.gmra.mrb[12].mxu0 %vm319_vm6, %v3194_v1  ;;  %2854 = vmatprep.subr.msk.bf16.mxu0 %vm3224_vm7, %v2852_v0 }
 0x59a   :  { %v2980_v3 = vunpack.i.h.bf16 %v2978_v2  ;;  %v2979_v5 = vunpack.i.l.bf16 %v2978_v2  ;;  %2857 = vmatpush3.bf16.xpose.msk.msra.mxu0 %vm3224_vm7, %v2852_v0  ;;  %2687 = vmatprep.mubr.msk.f32.mxu0 %vm319_vm6, %v3244_v27 }
 0x59b   :  { %2865 = vmatprep.subr.bf16.mxu0 %v3204_v6 }
 0x59c   :  { %v2858_v23 = vpack.c.bf16 %v2980_v3, %v2979_v5 }
 0x59e   :  { %2860 = vmatprep.subr.msk.bf16.mxu1 %vm3224_vm7, %v2858_v23 }
 0x59f   :  { %2681 = vmatmul.mubr.msk.f32.vlgmr.msra.gmra.mrb[12].mxu1 %vm319_vm6, %v3236_v22 }
 0x5a0   :  { %2863 = vmatpush3.bf16.xpose.msk.msra.mxu1 %vm3224_vm7, %v2858_v23  ;;  %2694 = vmatprep.mubr.msk.f32.mxu1 %vm319_vm6, %v3258_v29 }
 0x5a1   :  { %2688 = vmatmul.mubr.msk.f32.vlgmr.msra.gmra.mrb[14].mxu0 %vm319_vm6, %v3242_v26 }
 0x5a2   :  { %2867 = vmatpush3.bf16.msra.mxu0 %v3204_v6 }
 0x5a7   :  { %2695 = vmatmul.mubr.msk.f32.vlgmr.msra.gmra.mrb[14].mxu1 %vm319_vm6, %v3266_v30 }
 0x5e7   :  { %v3393_v1 = vpop.f32.mrb[4].mxu1 }
 0x5e8   :  { %v3395_v27 = vpop.f32.mrb[5].mxu1 }
 0x65a   :  { %v3397_v8 = vpop.f32.mrb[6].mxu1 }
 0x65b   :  { %v3399_v22 = vpop.f32.mrb[7].mxu1 }
 0x661   :  { %v3401_v14 = vpop.f32.mrb[8].mxu1 }
 0x662   :  { %v3403_v9 = vpop.f32.mrb[9].mxu1 }
 0x669   :  { %v3405_v29 = vpop.f32.mrb[10].mxu1 }
 0x66a   :  { %v3407_v26 = vpop.f32.mrb[11].mxu1 }
 0x66c   :  { %v2675_v6 = vpop.f32.mrb[12].mxu0 }
 0x66d   :  { %v1289_v10 = vpop.f32.mrb[13].mxu0 }
 0x672   :  { %v2682_v11 = vpop.f32.mrb[12].mxu1 }
 0x673   :  { %v1372_v30 = vpop.f32.mrb[13].mxu1 }
 0x674   :  { %v2689_v12 = vpop.f32.mrb[14].mxu0 }
 0x675   :  { %1559 = vrot.lane.b32.xlu1 %v2689_v12, %s3053_s21  ;;  %v1455_v13 = vpop.f32.mrb[15].mxu0 }
 0x676   :  { %1557 = vrot.lane.b32.xlu0 %v1455_v13, %s3053_s21 }
 0x679   :  { %1551 = vrot.lane.b32.xlu1 %v2682_v11, %s3054_s22 }
 0x67a   :  { %1549 = vrot.lane.b32.xlu0 %v1372_v30, %s3054_s22  ;;  %v2696_v15 = vpop.f32.mrb[14].mxu1 }
 0x67b   :  { %v1538_v16 = vpop.f32.mrb[15].mxu1 }
 0x67d   :  { %1567 = vrot.lane.b32.xlu1 %v2696_v15, %s3055_s23 }
 0x67e   :  { %1565 = vrot.lane.b32.xlu0 %v1538_v16, %s3055_s23 }
 0x681   :  { %1581 = vrot.lane.b32.xlu1 %v2442_v17, %s3054_s22 }
 0x682   :  { %1579 = vrot.lane.b32.xlu0 %v2441_v18, %s3054_s22 }
 0x685   :  { %1587 = vrot.lane.b32.xlu1 %v2442_v17, %s3053_s21 }
 0x686   :  { %1585 = vrot.lane.b32.xlu0 %v2441_v18, %s3053_s21 }
 0x6e7   :  { %v1560_v19 = vpop.permute.xlu1 %1559 }
 0x6e8   :  { %v1558_v20 = vpop.permute.xlu0 %1557 }
 0x6eb   :  { %v1552_v21 = vpop.permute.xlu1 %1551 }
 0x6ec   :  { %v1572_v24 = vsel %vm700_vm8, %v2675_v6, %v1552_v21  ;;  %v1550_v25 = vpop.permute.xlu0 %1549 }
 0x6ed   :  { %v1571_v28 = vsel %vm700_vm8, %v1289_v10, %v1550_v25  ;;  %v1574_v32 = vsel %vm227_vm5, %v1572_v24, %v1560_v19  ;;  %v863_v25 = vsel %vm700_vm8, %v3337_v40, 0.0 }
 0x6ee   :  { %v1573_v36 = vsel %vm227_vm5, %v1571_v28, %v1558_v20  ;;  %v972_v28 = vsel %vm700_vm8, %v3349_v49, 0.0 }
 0x6ef   :  { %v1568_v31 = vpop.permute.xlu1 %1567 }
 0x6f0   :  { %v1566_v33 = vpop.permute.xlu0 %1565  ;;  %v1576_v35 = vsel %vm705_vm9, %v1574_v32, %v1568_v31  ;;  %v860_v31 = vsel %vm700_vm8, %v3339_v41, 0.0  ;;  %v969_v32 = vsel %vm700_vm8, %v3345_v42, 0.0 }
 0x6f1   :  { %v1606_v37 = vsel %vm734_vm10, %v1576_v35, -inf  ;;  %v1575_v39 = vsel %vm705_vm9, %v1573_v36, %v1566_v33  ;;  %v1078_v33 = vsel %vm700_vm8, %v3353_v55, 0.0 }
 0x6f2   :  { %1607 = vmax.xlane.f32.xlu1 %v1606_v37  ;;  %v1603_v43 = vsel %vm734_vm10, %v1575_v39, -inf }
 0x6f3   :  { %1604 = vmax.xlane.f32.xlu0 %v1603_v43  ;;  %v1582_v44 = vpop.permute.xlu1 %1581 }
 0x6f4   :  { %v1580_v45 = vpop.permute.xlu0 %1579  ;;  %v1598_v5 = vsel %vm700_vm8, %v2442_v17, %v1582_v44 }
 0x6f5   :  { %v1597_v6 = vsel %vm700_vm8, %v2441_v18, %v1580_v45  ;;  %v1081_v45 = vsel %vm700_vm8, %v3361_v63, 0.0 }
 0x6f7   :  { %v1588_v4 = vpop.permute.xlu1 %1587 }
 0x6f8   :  { %v1586_v46 = vpop.permute.xlu0 %1585  ;;  %v1600_v30 = vsel %vm227_vm5, %v1598_v5, %v1588_v4 }
 0x6f9   :  { %v1599_v16 = vsel %vm227_vm5, %v1597_v6, %v1586_v46  ;;  %v749_v46 = vsel %vm700_vm8, %v3312_v38, 0.0 }
 0x703   :  { %1593 = vrot.lane.b32.xlu1 %v2442_v17, %s3055_s23 }
 0x707   :  { %2987 = vrot.lane.b32.xlu1 %v3206_v7, %s3051_s19 }
 0x709   :  { %1591 = vrot.lane.b32.xlu0 %v2441_v18, %s3055_s23 }
 0x70d   :  { %2982 = vrot.lane.b32.xlu0 %v3206_v7, %s3050_s18 }
 0x711   :  { %2992 = vrot.lane.b32.xlu0 %v3206_v7, %s3052_s20 }
 0x77f   :  { %v1608_v47 = vpop.xlane.xlu1 %1607 }
 0x780   :  { %v1610_v48 = vsub.f32 %v1576_v35, %v1608_v47  ;;  %v1605_v54 = vpop.xlane.xlu0 %1604 }
 0x781   :  { %v1609_v56 = vsub.f32 %v1575_v39, %v1605_v54 }
 0x782   :  { %v1613_v57 = vmul.f32 1.442695, %v1610_v48  ;;  %v752_v48 = vsel %vm700_vm8, %v3309_v34, 0.0 }
 0x783   :  { %v1611_v58 = vmul.f32 1.442695, %v1609_v56  ;;  %v1594_v59 = vpop.permute.xlu1 %1593 }
 0x784   :  { %3000 = vpow2.f32 %v1613_v57  ;;  %v1592_v60 = vpop.permute.xlu0 %1591  ;;  %v1602_v19 = vsel %vm705_vm9, %v1600_v30, %v1594_v59 }
 0x785   :  { %3002 = vpow2.f32 %v1611_v58  ;;  %v1601_v17 = vsel %vm705_vm9, %v1599_v16, %v1592_v60 }
 0x787   :  { %v2988_v61 = vpop.permute.xlu1 %2987 }
 0x788   :  { %v2990_v62 = vunpack.i.h.bf16 %v2988_v61  ;;  %v2989_v0 = vunpack.i.l.bf16 %v2988_v61  ;;  %v2983_v2 = vpop.permute.xlu0 %2982 }
 0x789   :  { %v2985_v3 = vunpack.i.h.bf16 %v2983_v2  ;;  %v2984_v7 = vunpack.i.l.bf16 %v2983_v2 }
 0x78a   :  { %v2872_v23 = vpack.c.bf16 %v2990_v62, %v2989_v0 }
 0x78b   :  { %v2868_v10 = vpack.c.bf16 %v2985_v3, %v2984_v7 }
 0x78c   :  { %2873 = vmatprep.subr.bf16.mxu0 %v2872_v23  ;;  %v2993_v11 = vpop.permute.xlu0 %2992 }
 0x78d   :  { %v2995_v12 = vunpack.i.h.bf16 %v2993_v11  ;;  %v2994_v13 = vunpack.i.l.bf16 %v2993_v11  ;;  %2869 = vmatprep.subr.bf16.mxu1 %v2868_v10 }
 0x78e   :  { %v3001_v15 = vpop.eup %3000  ;;  %2871 = vmatpush3.bf16.msra.mxu1 %v2868_v10 }
 0x78f   :  { %v3003_v20 = vpop.eup %3002  ;;  %v1616_v21 = vmul.f32 %v3001_v15, %v1602_v19  ;;  %v2876_v24 = vpack.c.bf16 %v2995_v12, %v2994_v13 }
 0x790   :  { %v1615_v18 = vmul.f32 %v3003_v20, %v1601_v17 }
 0x791   :  { %1718 = vrot.lane.b32.xlu0 %v1616_v21, %s3051_s19  ;;  %2877 = vmatprep.subr.bf16.mxu1 %v2876_v24  ;;  %v1620_v54 = vsel %vm700_vm8, %v1616_v21, 0.0 }
 0x792   :  { %1716 = vrot.lane.b32.xlu1 %v1615_v18, %s3051_s19  ;;  %2701 = vmatprep.mubr.msk.f32.mxu0 %vm700_vm8, %v1615_v18  ;;  %v1617_v47 = vsel %vm700_vm8, %v1615_v18, 0.0 }
 0x793   :  { %2702 = vmatmul.mubr.msk.f32.vlgmr.msra.gmra.mrb[16].mxu0 %vm700_vm8, %v1616_v21 }
 0x794   :  { %2875 = vmatpush3.bf16.msra.mxu0 %v2872_v23 }
 0x795   :  { %1829 = vrot.lane.b32.xlu0 %v1616_v21, %s3047_s16 }
 0x796   :  { %1827 = vrot.lane.b32.xlu1 %v1615_v18, %s3047_s16 }
 0x799   :  { %1938 = vrot.lane.b32.xlu0 %v1616_v21, %s3046_s15 }
 0x79a   :  { %1936 = vrot.lane.b32.xlu1 %v1615_v18, %s3046_s15 }
 0x7b8   :  { %864 = vadd.xlane.f32.xlu0 %v863_v25 }
 0x7bc   :  { %973 = vadd.xlane.f32.xlu0 %v972_v28 }
 0x7be   :  { %861 = vadd.xlane.f32.xlu1 %v860_v31 }
 0x7c2   :  { %970 = vadd.xlane.f32.xlu1 %v969_v32 }
 0x7c6   :  { %1079 = vadd.xlane.f32.xlu1 %v1078_v33 }
 0x803   :  { %v1719_v35 = vpop.permute.xlu0 %1718 }
 0x804   :  { %v1717_v36 = vpop.permute.xlu1 %1716  ;;  %v1725_v40 = vsel %vm700_vm8, %v1719_v35, 0.0 }
 0x805   :  { %2708 = vmatprep.mubr.msk.f32.mxu1 %vm700_vm8, %v1717_v36  ;;  %1726 = vadd.xlane.f32.xlu0 %v1725_v40  ;;  %v1722_v39 = vsel %vm700_vm8, %v1717_v36, 0.0 }
 0x806   :  { %2709 = vmatmul.mubr.msk.f32.vlgmr.msra.gmra.mrb[16].mxu1 %vm700_vm8, %v1719_v35 }
 0x807   :  { %2879 = vmatpush3.bf16.msra.mxu1 %v2876_v24  ;;  %v1830_v41 = vpop.permute.xlu0 %1829 }
 0x808   :  { %v1828_v49 = vpop.permute.xlu1 %1827  ;;  %v1836_v37 = vsel %vm700_vm8, %v1830_v41, 0.0 }
 0x809   :  { %2715 = vmatprep.mubr.msk.f32.mxu0 %vm700_vm8, %v1828_v49  ;;  %1837 = vadd.xlane.f32.xlu0 %v1836_v37  ;;  %v1833_v42 = vsel %vm700_vm8, %v1828_v49, 0.0 }
 0x80a   :  { %1834 = vadd.xlane.f32.xlu1 %v1833_v42  ;;  %2716 = vmatmul.mubr.msk.f32.vlgmr.msra.gmra.mrb[18].mxu0 %vm700_vm8, %v1830_v41 }
 0x80b   :  { %v1939_v43 = vpop.permute.xlu0 %1938 }
 0x80c   :  { %v1937_v55 = vpop.permute.xlu1 %1936  ;;  %v1945_v4 = vsel %vm700_vm8, %v1939_v43, 0.0 }
 0x80d   :  { %1723 = vadd.xlane.f32.xlu0 %v1722_v39  ;;  %2722 = vmatprep.mubr.msk.f32.mxu1 %vm700_vm8, %v1937_v55  ;;  %v1942_v44 = vsel %vm700_vm8, %v1937_v55, 0.0 }
 0x80e   :  { %1943 = vadd.xlane.f32.xlu1 %v1942_v44  ;;  %2723 = vmatmul.mubr.msk.f32.vlgmr.msra.gmra.mrb[18].mxu1 %vm700_vm8, %v1939_v43 }
 0x811   :  { %1082 = vadd.xlane.f32.xlu0 %v1081_v45 }
 0x812   :  { %1946 = vadd.xlane.f32.xlu1 %v1945_v4 }
 0x815   :  { %750 = vadd.xlane.f32.xlu0 %v749_v46 }
 0x816   :  { %1618 = vadd.xlane.f32.xlu1 %v1617_v47 }
 0x819   :  { %753 = vadd.xlane.f32.xlu0 %v752_v48 }
 0x81a   :  { %1621 = vadd.xlane.f32.xlu1 %v1620_v54 }
 0x845   :  { %v865_v56 = vpop.xlane.xlu0 %864 }
 0x846   :  { %v952_v63 = vmax.f32 %v865_v56, 1e-30 }
 0x848   :  { %3004 = vrcp.f32 %v952_v63 }
 0x849   :  { %v974_v57 = vpop.xlane.xlu0 %973 }
 0x84a   :  { %v1061_v58 = vmax.f32 %v974_v57, 1e-30 }
 0x84b   :  { %v862_v59 = vpop.xlane.xlu1 %861 }
 0x84c   :  { %3006 = vrcp.f32 %v1061_v58  ;;  %v951_v60 = vmax.f32 %v862_v59, 1e-30 }
 0x84e   :  { %3008 = vrcp.f32 %v951_v60 }
 0x84f   :  { %v971_v38 = vpop.xlane.xlu1 %970 }
 0x850   :  { %v1060_v61 = vmax.f32 %v971_v38, 1e-30 }
 0x852   :  { %v3005_v62 = vpop.eup %3004  ;;  %3010 = vrcp.f32 %v1060_v61 }
 0x853   :  { %v956_v0 = vmul.f32 %v3005_v62, %v952_v63  ;;  %v1080_v2 = vpop.xlane.xlu1 %1079 }
 0x854   :  { %v1169_v34 = vmax.f32 %v1080_v2, 1e-30 }
 0x855   :  { %v958_v3 = vsub.f32 2.0, %v956_v0 }
 0x856   :  { %v3007_v7 = vpop.eup %3006  ;;  %3012 = vrcp.f32 %v1169_v34 }
 0x857   :  { %v960_v5 = vmul.f32 %v3005_v62, %v958_v3  ;;  %v1065_v23 = vmul.f32 %v3007_v7, %v1061_v58 }
 0x858   :  { %v3009_v6 = vpop.eup %3008 }
 0x859   :  { %v1067_v10 = vsub.f32 2.0, %v1065_v23  ;;  %v955_v11 = vmul.f32 %v3009_v6, %v951_v60  ;;  %v962_v30 = vmul.f32 %v3397_v8, %v960_v5 }
 0x85b   :  { %v1069_v12 = vmul.f32 %v3007_v7, %v1067_v10  ;;  %v957_v13 = vsub.f32 2.0, %v955_v11  ;;  %1185 = vrot.lane.b32.xlu1 %v962_v30, %s3057_s29 }
 0x85c   :  { %v3011_v15 = vpop.eup %3010 }
 0x85d   :  { %v959_v16 = vmul.f32 %v3009_v6, %v957_v13  ;;  %v1064_v19 = vmul.f32 %v3011_v15, %v1060_v61  ;;  %v1071_v20 = vmul.f32 %v3401_v14, %v1069_v12 }
 0x85f   :  { %v1066_v21 = vsub.f32 2.0, %v1064_v19  ;;  %1193 = vrot.lane.b32.xlu1 %v1071_v20, %s3054_s22  ;;  %v961_v17 = vmul.f32 %v959_v16, %v3399_v22 }
 0x860   :  { %v3013_v24 = vpop.eup %3012 }
 0x861   :  { %v1068_v18 = vmul.f32 %v3011_v15, %v1066_v21  ;;  %v1173_v25 = vmul.f32 %v3013_v24, %v1169_v34  ;;  %1183 = vrot.lane.b32.xlu0 %v961_v17, %s3057_s29 }
 0x863   :  { %v1175_v8 = vsub.f32 2.0, %v1173_v25  ;;  %v1070_v28 = vmul.f32 %v1068_v18, %v3403_v9 }
 0x865   :  { %v1177_v31 = vmul.f32 %v3013_v24, %v1175_v8  ;;  %1191 = vrot.lane.b32.xlu0 %v1070_v28, %s3054_s22 }
 0x866   :  { %v3493_v32 = vpop.f32.mrb[16].mxu0 }
 0x867   :  { %v3495_v33 = vpop.f32.mrb[17].mxu0  ;;  %v1179_v14 = vmul.f32 %v1177_v31, %v3407_v26 }
 0x869   :  { %1199 = vrot.lane.b32.xlu0 %v1179_v14, %s3056_s28 }
 0x892   :  { %v1727_v22 = vpop.xlane.xlu0 %1726 }
 0x893   :  { %v1816_v40 = vmax.f32 %v1727_v22, 1e-30  ;;  %v2133_v22 = vld [vmem:[%s3591_s2 + $0x170] sm:$0xff] }
 0x895   :  { %3014 = vrcp.f32 %v1816_v40 }
 0x896   :  { %v1838_v35 = vpop.xlane.xlu0 %1837 }
 0x897   :  { %v1835_v36 = vpop.xlane.xlu1 %1834  ;;  %v1925_v49 = vmax.f32 %v1838_v35, 1e-30  ;;  %v2134_v35 = vld [vmem:[%s3591_s2 + $0x180] sm:$0xff] }
 0x898   :  { %v1924_v9 = vmax.f32 %v1835_v36, 1e-30  ;;  %v2880_v36 = vpack.c.bf16 %v2134_v35, %v2133_v22 }
 0x899   :  { %3016 = vrcp.f32 %v1925_v49 }
 0x89a   :  { %v1724_v41 = vpop.xlane.xlu0 %1723  ;;  %3018 = vrcp.f32 %v1924_v9  ;;  %2881 = vmatprep.subr.bf16.mxu0 %v2880_v36 }
 0x89b   :  { %v1944_v37 = vpop.xlane.xlu1 %1943  ;;  %v1815_v55 = vmax.f32 %v1724_v41, 1e-30  ;;  %2883 = vmatpush3.bf16.msra.mxu0 %v2880_v36 }
 0x89c   :  { %v2033_v39 = vmax.f32 %v1944_v37, 1e-30 }
 0x89d   :  { %3020 = vrcp.f32 %v1815_v55 }
 0x89e   :  { %v1083_v42 = vpop.xlane.xlu0 %1082  ;;  %3022 = vrcp.f32 %v2033_v39 }
 0x89f   :  { %v1170_v43 = vmax.f32 %v1083_v42, 1e-30  ;;  %v1947_v44 = vpop.xlane.xlu1 %1946  ;;  %v3015_v45 = vpop.eup %3014 }
 0x8a0   :  { %v2034_v26 = vmax.f32 %v1947_v44, 1e-30  ;;  %v1820_v4 = vmul.f32 %v3015_v45, %v1816_v40  ;;  %v2136_v40 = vld [vmem:[%s3591_s2 + $0x1a0] sm:$0xff] }
 0x8a1   :  { %3024 = vrcp.f32 %v1170_v43 }
 0x8a2   :  { %3026 = vrcp.f32 %v2034_v26  ;;  %v1822_v48 = vsub.f32 2.0, %v1820_v4 }
 0x8a3   :  { %v3017_v46 = vpop.eup %3016  ;;  %v1619_v37 = vpop.xlane.xlu1 %1618 }
 0x8a4   :  { %v3019_v47 = vpop.eup %3018  ;;  %v1929_v54 = vmul.f32 %v3017_v46, %v1925_v49  ;;  %v1824_v38 = vmul.f32 %v3015_v45, %v1822_v48  ;;  %v751_v49 = vpop.xlane.xlu0 %750 }
 0x8a5   :  { %v1928_v63 = vmul.f32 %v3019_v47, %v1924_v9  ;;  %v842_v9 = vmax.f32 %v751_v49, 1e-30 }
 0x8a6   :  { %v1931_v59 = vsub.f32 2.0, %v1929_v54 }
 0x8a7   :  { %v3021_v56 = vpop.eup %3020  ;;  %v1930_v61 = vsub.f32 2.0, %v1928_v63  ;;  %3028 = vrcp.f32 %v842_v9 }
 0x8a8   :  { %v3023_v57 = vpop.eup %3022  ;;  %v1819_v60 = vmul.f32 %v3021_v56, %v1815_v55  ;;  %v1933_v23 = vmul.f32 %v3017_v46, %v1931_v59  ;;  %v754_v42 = vpop.xlane.xlu0 %753  ;;  %v1704_v55 = vmax.f32 %v1619_v37, 1e-30 }
 0x8a9   :  { %v2037_v62 = vmul.f32 %v3023_v57, %v2033_v39  ;;  %v1932_v30 = vmul.f32 %v3019_v47, %v1930_v61  ;;  %v1622_v39 = vpop.xlane.xlu1 %1621 }
 0x8aa   :  { %v1821_v5 = vsub.f32 2.0, %v1819_v60  ;;  %v1705_v44 = vmax.f32 %v1622_v39, 1e-30  ;;  %3030 = vrcp.f32 %v1704_v55 }
 0x8ab   :  { %v3025_v58 = vpop.eup %3024  ;;  %v2039_v6 = vsub.f32 2.0, %v2037_v62 }
 0x8ac   :  { %v3027_v2 = vpop.eup %3026  ;;  %v1174_v34 = vmul.f32 %v3025_v58, %v1170_v43  ;;  %v1823_v19 = vmul.f32 %v3021_v56, %v1821_v5  ;;  %v843_v43 = vmax.f32 %v754_v42, 1e-30 }
 0x8ad   :  { %v2038_v10 = vmul.f32 %v3027_v2, %v2034_v26  ;;  %v2041_v17 = vmul.f32 %v3023_v57, %v2039_v6 }
 0x8ae   :  { %v1176_v12 = vsub.f32 2.0, %v1174_v34  ;;  %3032 = vrcp.f32 %v843_v43 }
 0x8af   :  { %v2040_v20 = vsub.f32 2.0, %v2038_v10  ;;  %3034 = vrcp.f32 %v1705_v44 }
 0x8b0   :  { %v1178_v24 = vmul.f32 %v3025_v58, %v1176_v12 }
 0x8b1   :  { %v2042_v28 = vmul.f32 %v3027_v2, %v2040_v20  ;;  %v3029_v4 = vpop.eup %3028 }
 0x8b2   :  { %v1180_v31 = vmul.f32 %v3405_v29, %v1178_v24  ;;  %v2135_v29 = vld [vmem:[%s3591_s2 + $0x190] sm:$0xff]  ;;  %v846_v54 = vmul.f32 %v3029_v4, %v842_v9 }
 0x8b3   :  { %v2884_v41 = vpack.c.bf16 %v2136_v40, %v2135_v29 }
 0x8b4   :  { %v3031_v46 = vpop.eup %3030  ;;  %v848_v60 = vsub.f32 2.0, %v846_v54 }
 0x8b5   :  { %2885 = vmatprep.subr.bf16.mxu0 %v2884_v41  ;;  %v1708_v56 = vmul.f32 %v3031_v46, %v1704_v55 }
 0x8b6   :  { %2887 = vmatpush3.bf16.msra.mxu0 %v2884_v41  ;;  %v850_v34 = vmul.f32 %v3029_v4, %v848_v60 }
 0x8b8   :  { %v3033_v47 = vpop.eup %3032  ;;  %v852_v10 = vmul.f32 %v850_v34, %v3395_v27 }
 0x8b9   :  { %v3035_v48 = vpop.eup %3034  ;;  %v847_v58 = vmul.f32 %v3033_v47, %v843_v43 }
 0x8ba   :  { %v1709_v59 = vmul.f32 %v3035_v48, %v1705_v44 }
 0x8bb   :  { %v849_v62 = vsub.f32 2.0, %v847_v58 }
 0x8bc   :  { %v1711_v2 = vsub.f32 2.0, %v1709_v59 }
 0x8bd   :  { %v851_v5 = vmul.f32 %v3033_v47, %v849_v62 }
 0x8be   :  { %v1713_v6 = vmul.f32 %v3035_v48, %v1711_v2 }
 0x8bf   :  { %v853_v12 = vmul.f32 %v3393_v1, %v851_v5 }
 0x8c0   :  { %v1715_v20 = vmul.f32 %v3493_v32, %v1713_v6 }
 0x8cd   :  { %v1186_v45 = vpop.permute.xlu1 %1185 }
 0x8d1   :  { %v1194_v57 = vpop.permute.xlu1 %1193 }
 0x8d3   :  { %v1184_v26 = vpop.permute.xlu0 %1183 }
 0x8d7   :  { %v1192_v63 = vpop.permute.xlu0 %1191 }
 0x8d9   :  { %v2710_v0 = vpop.f32.mrb[16].mxu1 }
 0x8da   :  { %v1826_v3 = vmul.f32 %v2710_v0, %v1824_v38  ;;  %v1806_v7 = vpop.f32.mrb[17].mxu1  ;;  %v1710_v38 = vsub.f32 2.0, %v1708_v56 }
 0x8db   :  { %v1825_v18 = vmul.f32 %v1823_v19, %v1806_v7  ;;  %v1200_v0 = vpop.permute.xlu0 %1199 }
 0x8dc   :  { %2049 = vrot.lane.b32.xlu1 %v1826_v3, %s3057_s29  ;;  %v1712_v3 = vmul.f32 %v3031_v46, %v1710_v38 }
 0x8dd   :  { %v2717_v11 = vpop.f32.mrb[18].mxu0 }
 0x8de   :  { %v1935_v13 = vmul.f32 %v2717_v11, %v1933_v23  ;;  %v1915_v15 = vpop.f32.mrb[19].mxu0  ;;  %v1714_v11 = vmul.f32 %v1712_v3, %v3495_v33 }
 0x8df   :  { %v1934_v16 = vmul.f32 %v1932_v30, %v1915_v15 }
 0x8e0   :  { %2057 = vrot.lane.b32.xlu1 %v1935_v13, %s3054_s22  ;;  %v1205_v13 = vsel %vm319_vm6, %v852_v10, %v1184_v26 }
 0x8e1   :  { %2055 = vrot.lane.b32.xlu0 %v1934_v16, %s3054_s22  ;;  %v2724_v21 = vpop.f32.mrb[18].mxu1  ;;  %v1207_v19 = vsel %vm700_vm8, %v1205_v13, %v1192_v63 }
 0x8e2   :  { %v2024_v25 = vpop.f32.mrb[19].mxu1  ;;  %v2044_v14 = vmul.f32 %v2724_v21, %v2042_v28  ;;  %v1210_v27 = vsel %vm1209_vm11, %v1207_v19, %v1200_v0 }
 0x8e3   :  { %v2043_v8 = vmul.f32 %v2041_v17, %v2024_v25  ;;  %v1206_v17 = vsel %vm319_vm6, %v853_v12, %v1186_v45 }
 0x8e4   :  { %2047 = vrot.lane.b32.xlu1 %v1825_v18, %s3057_s29  ;;  %v1208_v24 = vsel %vm700_vm8, %v1206_v17, %v1194_v57 }
 0x8e5   :  { %2063 = vrot.lane.b32.xlu0 %v2043_v8, %s3056_s28 }
 0x8e8   :  { %1201 = vrot.lane.b32.xlu1 %v1180_v31, %s3056_s28 }
 0x8e9   :  { %2065 = vrot.lane.b32.xlu0 %v2044_v14, %s3056_s28 }
 0x94e   :  { %v2050_v61 = vpop.permute.xlu1 %2049 }
 0x94f   :  { %v2070_v1 = vsel %vm319_vm6, %v1715_v20, %v2050_v61 }
 0x952   :  { %v2058_v7 = vpop.permute.xlu1 %2057 }
 0x953   :  { %v2056_v23 = vpop.permute.xlu0 %2055  ;;  %v2072_v8 = vsel %vm700_vm8, %v2070_v1, %v2058_v7  ;;  %v2229_v1 = vld [vmem:[%s3591_s2 + $0x1d0] sm:$0xff] }
 0x956   :  { %v2048_v30 = vpop.permute.xlu1 %2047 }
 0x957   :  { %v2069_v15 = vsel %vm319_vm6, %v1714_v11, %v2048_v30  ;;  %v2064_v16 = vpop.permute.xlu0 %2063 }
 0x958   :  { %v2071_v21 = vsel %vm700_vm8, %v2069_v15, %v2056_v23 }
 0x959   :  { %v2073_v33 = vsel %vm1209_vm11, %v2071_v21, %v2064_v16 }
 0x95a   :  { %v2075_v18 = vadd.f32 %v2073_v33, %v1210_v27  ;;  %v1202_v25 = vpop.permute.xlu1 %1201 }
 0x95b   :  { %v1211_v28 = vsel %vm1209_vm11, %v1208_v24, %v1202_v25  ;;  %v2066_v31 = vpop.permute.xlu0 %2065 }
 0x95c   :  { %v2079_v32 = vmul.f32 0.70710677, %v2075_v18  ;;  %v2074_v14 = vsel %vm1209_vm11, %v2072_v8, %v2066_v31  ;;  %v2077_v16 = vmul.f32 0.5, %v2075_v18  ;;  %v2230_v18 = vld [vmem:[%s3591_s2 + $0x1e0] sm:$0xff]  ;;  %v2231_v8 = vld [vmem:[%s3591_s2 + $0x1f0] sm:$0xff] }
 0x95d   :  { %v2076_v22 = vadd.f32 %v2074_v14, %v1211_v28  ;;  %v2888_v25 = vpack.c.bf16 %v2230_v18, %v2229_v1  ;;  %v2232_v28 = vld [vmem:[%s3591_s2 + $0x200] sm:$0xff]  ;;  %v2318_v14 = vld [vmem:[%s3591_s2 + $0x230] sm:$0xff] }
 0x95e   :  { %vm2081_vm12 = vcmp.ge.f32.partialorder %v2079_v32, 0.0  ;;  %v2083_v35 = vsub.f32 0.0, %v2079_v32  ;;  %v2892_v31 = vpack.c.bf16 %v2232_v28, %v2231_v8 }
 0x95f   :  { %v2080_v36 = vmul.f32 0.70710677, %v2076_v22  ;;  %v2078_v27 = vmul.f32 0.5, %v2076_v22  ;;  %2889 = vmatprep.subr.bf16.mxu1 %v2888_v25 }
 0x960   :  { %v2085_v29 = vsel %vm2081_vm12, %v2079_v32, %v2083_v35  ;;  %2891 = vmatpush3.bf16.msra.mxu1 %v2888_v25  ;;  %v2317_v32 = vld [vmem:[%s3591_s2 + $0x220] sm:$0xff] }
 0x961   :  { %v2087_v40 = vmul.f32 0.3275911, %v2085_v29  ;;  %vm2082_vm13 = vcmp.ge.f32.partialorder %v2080_v36, 0.0  ;;  %v2084_v41 = vsub.f32 0.0, %v2080_v36  ;;  %v2113_v55 = vsub.f32 0.0, %v2085_v29  ;;  %2893 = vmatprep.subr.bf16.mxu1 %v2892_v31 }
 0x962   :  { %v2896_v22 = vpack.c.bf16 %v2318_v14, %v2317_v32  ;;  %v2219_v35 = vld [vmem:[%s3591_s2 + $0x1c0] ss:$0 sm:$0xff] }
 0x963   :  { %v2089_v49 = vadd.f32 1.0, %v2087_v40  ;;  %v2086_v37 = vsel %vm2082_vm13, %v2080_v36, %v2084_v41  ;;  %v2115_v44 = vmul.f32 %v2113_v55, %v2085_v29  ;;  %v2137_v36 = vld [vmem:[%s3591_s2 + $0x1b0] ss:$0 sm:$0xff]  ;;  %v2222_v29 = vsub.f32 1.0, %v2219_v35 }
 0x964   :  { %v2088_v9 = vmul.f32 0.3275911, %v2086_v37  ;;  %v2114_v39 = vsub.f32 0.0, %v2086_v37  ;;  %2895 = vmatpush3.bf16.msra.mxu1 %v2892_v31  ;;  %2897 = vmatprep.subr.bf16.mxu0 %v2896_v22 }
 0x965   :  { %3036 = vrcp.f32 %v2089_v49  ;;  %v2117_v47 = vmul.f32 1.442695, %v2115_v44  ;;  %v2223_v55 = vmul.f32 %v2222_v29, %v204_v52 }
 0x966   :  { %v2090_v42 = vadd.f32 1.0, %v2088_v9  ;;  %v2116_v46 = vmul.f32 %v2114_v39, %v2086_v37  ;;  %v2224_v9 = vmul.f32 %v2222_v29, %v205_v53 }
 0x968   :  { %3038 = vrcp.f32 %v2090_v42  ;;  %v2119_v57 = vmul.f32 1.442695, %v2116_v46 }
 0x969   :  { %3040 = vpow2.f32 %v2117_v47 }
 0x96a   :  { %3042 = vpow2.f32 %v2119_v57 }
 0x96f   :  { %v3037_v43 = vpop.eup %3036 }
 0x970   :  { %v2095_v26 = vmul.f32 1.0614054, %v3037_v43 }
 0x972   :  { %v3039_v45 = vpop.eup %3038  ;;  %v2097_v4 = vadd.f32 -1.4531521, %v2095_v26 }
 0x973   :  { %v2096_v48 = vmul.f32 1.0614054, %v3039_v45  ;;  %v3041_v7 = vpop.eup %3040 }
 0x974   :  { %v2099_v54 = vmul.f32 %v3037_v43, %v2097_v4  ;;  %v3043_v10 = vpop.eup %3042  ;;  %v2319_v4 = vld [vmem:[%s3591_s2 + $0x240] sm:$0xff] }
 0x975   :  { %v2098_v56 = vadd.f32 -1.4531521, %v2096_v48  ;;  %v2900_v53 = vpack.c.bf16 %v2320_v51, %v2319_v4 }
 0x976   :  { %v2101_v63 = vadd.f32 1.4214138, %v2099_v54 }
 0x977   :  { %v2100_v58 = vmul.f32 %v3039_v45, %v2098_v56 }
 0x978   :  { %v2103_v59 = vmul.f32 %v3037_v43, %v2101_v63  ;;  %v2321_v63 = vld [vmem:[%s3591_s2 + $0x260] ss:$0 sm:$0xff] }
 0x979   :  { %v2102_v60 = vadd.f32 1.4214138, %v2100_v58 }
 0x97a   :  { %v2105_v38 = vadd.f32 -0.28449672, %v2103_v59 }
 0x97b   :  { %v2104_v61 = vmul.f32 %v3039_v45, %v2102_v60 }
 0x97c   :  { %v2107_v62 = vmul.f32 %v3037_v43, %v2105_v38 }
 0x97d   :  { %v2106_v0 = vadd.f32 -0.28449672, %v2104_v61 }
 0x97e   :  { %v2109_v2 = vadd.f32 0.2548296, %v2107_v62 }
 0x97f   :  { %v2108_v34 = vmul.f32 %v3039_v45, %v2106_v0 }
 0x980   :  { %v2111_v3 = vmul.f32 %v3037_v43, %v2109_v2 }
 0x981   :  { %v2110_v5 = vadd.f32 0.2548296, %v2108_v34 }
 0x982   :  { %v2121_v23 = vmul.f32 %v3041_v7, %v2111_v3 }
 0x983   :  { %v2112_v6 = vmul.f32 %v3039_v45, %v2110_v5 }
 0x984   :  { %v2123_v11 = vsub.f32 1.0, %v2121_v23 }
 0x985   :  { %v2122_v30 = vmul.f32 %v3043_v10, %v2112_v6 }
 0x986   :  { %v2125_v12 = vsub.f32 0.0, %v2123_v11 }
 0x987   :  { %v2124_v13 = vsub.f32 1.0, %v2122_v30 }
 0x988   :  { %v2127_v15 = vsel %vm2081_vm12, %v2123_v11, %v2125_v12 }
 0x989   :  { %v2129_v19 = vadd.f32 1.0, %v2127_v15  ;;  %v2126_v20 = vsub.f32 0.0, %v2124_v13 }
 0x98b   :  { %v2131_v21 = vmul.f32 %v2129_v19, %v2077_v16  ;;  %v2128_v17 = vsel %vm2082_vm13, %v2124_v13, %v2126_v20 }
 0x98c   :  { %v2130_v33 = vadd.f32 1.0, %v2128_v17 }
 0x98d   :  { %2733 = vmatprep.mubr.msk.f32.mxu0 %vm227_vm5, %v2131_v21 }
 0x98e   :  { %v2132_v24 = vmul.f32 %v2130_v33, %v2078_v27 }
 0x990   :  { %2734 = vmatmul.mubr.msk.f32.vlgmr.msra.gmra.mrb[20].mxu0 %vm227_vm5, %v2132_v24 }
 0x991   :  { %2899 = vmatpush3.bf16.msra.mxu0 %v2896_v22 }
 0x992   :  { %2901 = vmatprep.subr.bf16.mxu0 %v2900_v53 }
 0x995   :  { %2903 = vmatpush3.bf16.msra.mxu0 %v2900_v53 }
 0xa63   :  { %v2735_v40 = vpop.f32.mrb[20].mxu0 }
 0xa64   :  { %v2216_v41 = vadd.f32 %v2735_v40, %v2137_v36  ;;  %v2210_v49 = vpop.f32.mrb[21].mxu0 }
 0xa65   :  { %v2211_v37 = vadd.f32 %v2210_v49, %v2137_v36 }
 0xa66   :  { %v2221_v42 = vmul.f32 %v2219_v35, %v2216_v41 }
 0xa67   :  { %v2220_v39 = vmul.f32 %v2219_v35, %v2211_v37 }
 0xa68   :  { %v2226_v43 = vadd.f32 %v2224_v9, %v2221_v42 }
 0xa69   :  { %v2225_v44 = vadd.f32 %v2223_v55, %v2220_v39 }
 0xa6a   :  { %v2228_v45 = vmax.f32 %v2226_v43, 0.0 }
 0xa6b   :  { %v2227_v26 = vmax.f32 %v2225_v44, 0.0 }
 0xa6d   :  { %2744 = vmatprep.mubr.msk.f32.mxu1 %vm227_vm5, %v2227_v26 }
 0xa6e   :  { %2745 = vmatmul.mubr.msk.f32.vlgmr.msra.gmra.mrb[20].mxu1 %vm227_vm5, %v2228_v45 }
 0xb41   :  { %v2746_v52 = vpop.f32.mrb[20].mxu1 }
 0xb42   :  { %v2312_v46 = vadd.f32 %v2746_v52, %v2233_v50  ;;  %v2306_v47 = vpop.f32.mrb[21].mxu1 }
 0xb43   :  { %v2307_v48 = vadd.f32 %v2306_v47, %v2233_v50 }
 0xb44   :  { %v2316_v56 = vmax.f32 %v2312_v46, 0.0 }
 0xb45   :  { %v2315_v54 = vmax.f32 %v2307_v48, 0.0 }
 0xb47   :  { %2755 = vmatprep.mubr.msk.f32.mxu0 %vm227_vm5, %v2315_v54 }
 0xb48   :  { %2756 = vmatmul.mubr.msk.f32.vlgmr.msra.gmra.mrb[22].mxu0 %vm227_vm5, %v2316_v56 }
 0xc1b   :  { %v2757_v57 = vpop.f32.mrb[22].mxu0 }
 0xc1c   :  { %v2400_v58 = vadd.f32 %v2757_v57, %v2321_v63  ;;  %v2394_v59 = vpop.f32.mrb[23].mxu0 }
 0xc1d   :  { %v2395_v60 = vadd.f32 %v2394_v59, %v2321_v63 }
 0xc1e   :  { %2404 = vst [vmem:[%s3594_s3 + $0x8] sm:$0xff] %v2400_v58 }
 0xc1f   :  { %2403 = vst [vmem:[%s3594_s3] sm:$0xff] %v2395_v60 }

</bundles_post_ra>
